<compile_context>
chip_gen: v5e
topology: v5e:2x2
jax: 0.10.0
libtpu: 0.0.40
codegen_flags: <defaults>
</compile_context>

<pallas_src>
import math

import jax
import jax.numpy as jnp
import numpy as np
from jax.experimental import pallas as pl
from jax.experimental.pallas import tpu as pltpu

EPS = 1e-5
HALO = 16                      # halo reads are one aligned 16-row neighbour block
TH_CAP = 256                   # max H-band height (keeps bands inside VMEM)
VMEM_LIMIT = 48 * 1024 * 1024  # safe on v7x (64 MiB/TC); fine on v5e/v6e


# ----------------------------------------------------------------------------
# in-kernel helpers
# ----------------------------------------------------------------------------
def _conv3x3_band(top, mid, bot, wb_ref):
    """3x3 conv of one H-band as exactly 3 full-height lane-dense MXU matmuls.

    `top`/`bot` are the single (already masked) halo rows above/below the band,
    `mid` the th interior rows, all f32.  The dx taps and the W zero padding
    live inside the banded weights wb_ref[dy] (bf16), so the only data movement
    here is a row-shift (concatenate) of register values.  Accumulation is f32.
    """
    th = mid.shape[0]
    f32 = jnp.float32
    bf = jnp.bfloat16
    up_in = jnp.concatenate([top, mid[:th - 1]], axis=0).astype(bf)   # row g-1
    ct_in = mid.astype(bf)                                            # row g
    dn_in = jnp.concatenate([mid[1:], bot], axis=0).astype(bf)        # row g+1
    return (jnp.dot(up_in, wb_ref[0], preferred_element_type=f32)
            + jnp.dot(ct_in, wb_ref[1], preferred_element_type=f32)
            + jnp.dot(dn_in, wb_ref[2], preferred_element_type=f32))


def _conv1_band_kernel(xp_ref, xm_ref, xn_ref, wb_ref, z_ref, part_ref):
    hb = pl.program_id(1)
    nhb = pl.num_programs(1)
    mid = xm_ref[...].astype(jnp.float32)
    # halo rows, zero-masked at the image borders (SAME padding of x)
    top = jnp.where(hb > 0, xp_ref[HALO - 1:HALO, :].astype(jnp.float32), 0.0)
    bot = jnp.where(hb < nhb - 1, xn_ref[0:1, :].astype(jnp.float32), 0.0)
    z = _conv3x3_band(top, mid, bot, wb_ref).astype(jnp.bfloat16)
    z_ref[...] = z
    # per-tile partial BN stats from the *stored* (bf16-rounded) values
    zf = z.astype(jnp.float32)
    part_ref[...] = jnp.concatenate(
        [jnp.sum(zf, axis=0, keepdims=True),
         jnp.sum(zf * zf, axis=0, keepdims=True)], axis=0)


def _conv2_band_kernel(zp_ref, zm_ref, zn_ref, sc_ref, sh_ref, wb_ref,
                       z2_ref, part_ref):
    hb = pl.program_id(1)
    nhb = pl.num_programs(1)
    sc = sc_ref[...]
    sh = sh_ref[...]
    act = lambda v: jnp.maximum(v.astype(jnp.float32) * sc + sh, 0.0)  # BN1+ReLU
    mid = act(zm_ref[...])
    # mask AFTER the activation: it models the zero padding of h1 at the border
    top = jnp.where(hb > 0, act(zp_ref[HALO - 1:HALO, :]), 0.0)
    bot = jnp.where(hb < nhb - 1, act(zn_ref[0:1, :]), 0.0)
    z2 = _conv3x3_band(top, mid, bot, wb_ref).astype(jnp.bfloat16)
    z2_ref[...] = z2
    zf = z2.astype(jnp.float32)
    part_ref[...] = jnp.concatenate(
        [jnp.sum(zf, axis=0, keepdims=True),
         jnp.sum(zf * zf, axis=0, keepdims=True)], axis=0)


def _bn_relu_pool_kernel(z_ref, sc_ref, sh_ref, sel_ref, s_ref, p_ref):
    sc = sc_ref[...]
    sh = sh_ref[...]
    s = jnp.maximum(z_ref[...].astype(jnp.float32) * sc + sh, 0.0)     # BN2+ReLU
    s_ref[...] = s
    th3, wc = s.shape
    f32 = jnp.float32
    # 2x2 max-pool with a lane-dense packed output:
    #   packed row r = [pooled row 2r | pooled row 2r+1] along the 128 lanes.
    s4 = s.reshape(th3 // 4, 4, wc)
    rows_a = jnp.max(s4[:, 0:2, :], axis=1)      # H-max for pooled rows 2r
    rows_b = jnp.max(s4[:, 2:4, :], axis=1)      # H-max for pooled rows 2r+1
    # W-max + compaction via 0/1 selection matmuls (no lane relayout):
    p_lo = jnp.maximum(jnp.dot(rows_a, sel_ref[0], preferred_element_type=f32),
                       jnp.dot(rows_a, sel_ref[1], preferred_element_type=f32))
    p_hi = jnp.maximum(jnp.dot(rows_b, sel_ref[2], preferred_element_type=f32),
                       jnp.dot(rows_b, sel_ref[3], preferred_element_type=f32))
    p_ref[...] = p_lo + p_hi                     # disjoint lane halves


# ----------------------------------------------------------------------------
# wrapper-side (tiny, trace-time) helpers
# ----------------------------------------------------------------------------
def _pick_band(h, cap=TH_CAP):
    """Largest multiple of 16 that divides H, capped (VMEM budget for bands)."""
    best = 16
    for d in range(16, min(h, cap) + 1, 16):
        if h % d == 0:
            best = d
    return best


def _band_weights(w_hwio, width):
    """(3,3,Cin,Cout) HWIO -> (3, W*Cin, W*Cout) banded matrices (one per dy).

    WB[dy][wi*Cin+ci, wo*Cout+co] = w[dy, wi-wo+1, ci, co] for |wi-wo|<=1, zero
    otherwise; the missing off-band blocks realise the 'SAME' W padding.
    """
    _, _, cin, cout = w_hwio.shape
    sel = np.zeros((3, width, width), np.float32)
    for dx in range(3):
        for wo in range(width):
            wi = wo + dx - 1
            if 0 <= wi < width:
                sel[dx, wi, wo] = 1.0
    wb = jnp.einsum("xab,dxce->dacbe", jnp.asarray(sel), w_hwio.astype(jnp.float32))
    return wb.reshape(3, width * cin, width * cout)


def _pool_selectors(width, cout):
    """0/1 selectors: (4, W*Cout, W*Cout) = [even->lo, odd->lo, even->hi, odd->hi]."""
    wc = width * cout
    wcp = (width // 2) * cout
    sel = np.zeros((4, wc, 2 * wcp), np.float32)
    for wo in range(width // 2):
        for c in range(cout):
            le = (2 * wo) * cout + c
            lo = (2 * wo + 1) * cout + c
            dst = wo * cout + c
            sel[0, le, dst] = 1.0
            sel[1, lo, dst] = 1.0
            sel[2, le, wcp + dst] = 1.0
            sel[3, lo, wcp + dst] = 1.0
    return jnp.asarray(sel)


def _finalize_bn(part, gamma, beta, count, width, cout):
    """Per-tile (sum, sumsq) partials -> per-lane BN scale/shift row vectors."""
    sums = part.sum(axis=(0, 1)).reshape(2, width, cout).sum(axis=1)   # (2, Cout)
    mu = sums[0] / count
    var = jnp.maximum(sums[1] / count - mu * mu, 0.0)   # biased; clamped >= 0
    scale = gamma * jax.lax.rsqrt(var + EPS)
    shift = beta - mu * scale
    return jnp.tile(scale, width)[None, :], jnp.tile(shift, width)[None, :]


# ----------------------------------------------------------------------------
# forward
# ----------------------------------------------------------------------------
def encoder_block_forward(x_nchw, params):
    """Mirrors encoder_block.forward (training-mode BN): returns (s, p) NCHW."""
    N, cin, H, W = x_nchw.shape
    cout = params["w1"].shape[-1]
    assert H % 16 == 0 and W % 2 == 0
    assert (W * cout) % 128 == 0, "lane-dense activations need W*Cout % 128 == 0"

    # lane-dense input: zero-pad Cin so W*Cin_pad is a multiple of 128
    q = 128 // math.gcd(W, 128)
    cin_pad = cin if (W * cin) % 128 == 0 else ((cin + q - 1) // q) * q

    th = _pick_band(H)
    th_pool = th
    assert th % HALO == 0 and H % th == 0
    assert th_pool % 4 == 0 and (th_pool == H or (th_pool // 4) % 8 == 0)

    wc_in, wc = W * cin_pad, W * cout          # note 2*((W//2)*Cout) == wc

    # NCHW -> lane-dense rows (N, H, W*Cin_pad); MXU operand dtype bf16.
    x = jnp.transpose(x_nchw, (0, 2, 3, 1)).astype(jnp.float32)
    if cin_pad != cin:
        x = jnp.pad(x, ((0, 0), (0, 0), (0, 0), (0, cin_pad - cin)))
    x_ld = x.reshape(N, H, wc_in).astype(jnp.bfloat16)

    w1 = params["w1"].astype(jnp.float32)
    if cin_pad != cin:
        w1 = jnp.pad(w1, ((0, 0), (0, 0), (0, cin_pad - cin), (0, 0)))
    wb1 = _band_weights(w1, W).astype(jnp.bfloat16)
    wb2 = _band_weights(params["w2"], W).astype(jnp.bfloat16)
    sel = _pool_selectors(W, cout)

    n_hb = H // th
    grid = (N, n_hb)
    cparams = pltpu.CompilerParams(
        dimension_semantics=("parallel", "parallel"),
        vmem_limit_bytes=VMEM_LIMIT)

    main_map = lambda n, hb: (n, hb, 0)
    prev_map = lambda n, hb: (n, jnp.maximum(hb * (th // HALO) - 1, 0), 0)
    next_map = lambda n, hb: (n, jnp.minimum((hb + 1) * (th // HALO), H // HALO - 1), 0)
    vec_map = lambda n, hb: (0, 0)
    wgt_map = lambda n, hb: (0, 0, 0)
    part_map = lambda n, hb: (n, hb, 0, 0)

    # ---- pass 1: conv1 per band + per-tile partial BN1 stats ----------------
    z1, part1 = pl.pallas_call(
        _conv1_band_kernel,
        grid=grid,
        in_specs=[
            pl.BlockSpec((None, HALO, wc_in), prev_map),
            pl.BlockSpec((None, th, wc_in), main_map),
            pl.BlockSpec((None, HALO, wc_in), next_map),
            pl.BlockSpec((3, wc_in, wc), wgt_map),
        ],
        out_specs=(
            pl.BlockSpec((None, th, wc), main_map),
            pl.BlockSpec((None, None, 2, wc), part_map),
        ),
        out_shape=(
            jax.ShapeDtypeStruct((N, H, wc), jnp.bfloat16),
            jax.ShapeDtypeStruct((N, n_hb, 2, wc), jnp.float32),
        ),
        compiler_params=cparams,
    )(x_ld, x_ld, x_ld, wb1)

    scale1, shift1 = _finalize_bn(part1, params["g1"], params["be1"], N * H * W, W, cout)

    # ---- pass 2: BN1+ReLU on the fly -> conv2 + partial BN2 stats -----------
    z2, part2 = pl.pallas_call(
        _conv2_band_kernel,
        grid=grid,
        in_specs=[
            pl.BlockSpec((None, HALO, wc), prev_map),
            pl.BlockSpec((None, th, wc), main_map),
            pl.BlockSpec((None, HALO, wc), next_map),
            pl.BlockSpec((1, wc), vec_map),
            pl.BlockSpec((1, wc), vec_map),
            pl.BlockSpec((3, wc, wc), wgt_map),
        ],
        out_specs=(
            pl.BlockSpec((None, th, wc), main_map),
            pl.BlockSpec((None, None, 2, wc), part_map),
        ),
        out_shape=(
            jax.ShapeDtypeStruct((N, H, wc), jnp.bfloat16),
            jax.ShapeDtypeStruct((N, n_hb, 2, wc), jnp.float32),
        ),
        compiler_params=cparams,
    )(z1, z1, z1, scale1, shift1, wb2)

    scale2, shift2 = _finalize_bn(part2, params["g2"], params["be2"], N * H * W, W, cout)

    # ---- pass 3: BN2+ReLU -> s, fused 2x2 max-pool -> lane-dense packed p ---
    n_hb3 = H // th_pool
    s_flat, p_flat = pl.pallas_call(
        _bn_relu_pool_kernel,
        grid=(N, n_hb3),
        in_specs=[
            pl.BlockSpec((None, th_pool, wc), main_map),
            pl.BlockSpec((1, wc), vec_map),
            pl.BlockSpec((1, wc), vec_map),
            pl.BlockSpec((4, wc, wc), wgt_map),
        ],
        out_specs=(
            pl.BlockSpec((None, th_pool, wc), main_map),
            pl.BlockSpec((None, th_pool // 4, wc), main_map),
        ),
        out_shape=(
            jax.ShapeDtypeStruct((N, H, wc), jnp.float32),
            jax.ShapeDtypeStruct((N, H // 4, wc), jnp.float32),
        ),
        compiler_params=cparams,
    )(z2, scale2, shift2, sel)

    # back to NCHW to match the PyTorch module (free row-major reshapes).
    s = s_flat.reshape(N, H, W, cout).transpose(0, 3, 1, 2)
    p = p_flat.reshape(N, H // 2, W // 2, cout).transpose(0, 3, 1, 2)
    return s, p


# ----------------------------------------------------------------------------
# params + pure-JAX reference (same precision policy as the kernel: bf16 MXU
# operands, f32 accumulate, bf16 storage of conv outputs, BN stats from the
# stored values).  Conv biases are omitted everywhere: under training-mode
# BatchNorm a conv bias cancels exactly (it only shifts the per-channel mean).
# ----------------------------------------------------------------------------
def init_params(key, in_c, out_c):
    k1, k2, k3, k4, k5, k6 = jax.random.split(key, 6)
    return {
        "w1": jax.random.normal(k1, (3, 3, in_c, out_c), jnp.float32) / np.sqrt(in_c * 9),
        "g1": 1.0 + 0.1 * jax.random.normal(k2, (out_c,), jnp.float32),
        "be1": 0.1 * jax.random.normal(k3, (out_c,), jnp.float32),
        "w2": jax.random.normal(k4, (3, 3, out_c, out_c), jnp.float32) / np.sqrt(out_c * 9),
        "g2": 1.0 + 0.1 * jax.random.normal(k5, (out_c,), jnp.float32),
        "be2": 0.1 * jax.random.normal(k6, (out_c,), jnp.float32),
    }


def ref_forward(x_nchw, params):
    def conv(x, w):
        y = jax.lax.conv_general_dilated(
            x.astype(jnp.bfloat16), w.astype(jnp.bfloat16),
            window_strides=(1, 1), padding="SAME",
            dimension_numbers=("NHWC", "HWIO", "NHWC"),
            preferred_element_type=jnp.float32)
        return y.astype(jnp.bfloat16).astype(jnp.float32)   # rounded storage

    def bn_relu(y, g, be):
        mu = jnp.mean(y, axis=(0, 1, 2), keepdims=True)
        var = jnp.mean((y - mu) ** 2, axis=(0, 1, 2), keepdims=True)
        yn = (y - mu) * (g.reshape(1, 1, 1, -1) * jax.lax.rsqrt(var + EPS)) \
            + be.reshape(1, 1, 1, -1)
        return jnp.maximum(yn, 0.0)

    x = jnp.transpose(x_nchw, (0, 2, 3, 1)).astype(jnp.float32)
    h = bn_relu(conv(x, params["w1"]), params["g1"], params["be1"])
    s = bn_relu(conv(h, params["w2"]), params["g2"], params["be2"])
    p = jax.lax.reduce_window(s, -jnp.inf, jax.lax.max,
                              (1, 2, 2, 1), (1, 2, 2, 1), "VALID")
    return jnp.transpose(s, (0, 3, 1, 2)), jnp.transpose(p, (0, 3, 1, 2))


if __name__ == "__main__":
    key = jax.random.PRNGKey(0)
    kx, kp = jax.random.split(key)

    N, in_c, out_c, H, W = 2, 4, 8, 16, 16
    x = jax.random.normal(kx, (N, in_c, H, W), jnp.float32)
    params = init_params(kp, in_c, out_c)

    fwd = jax.jit(encoder_block_forward)
    s, p = jax.block_until_ready(fwd(x, params))
    assert s.shape == (N, out_c, H, W)
    assert p.shape == (N, out_c, H // 2, W // 2)

    s_ref, p_ref = ref_forward(x, params)
    # 1e-2 tolerances: intermediates are stored in bf16 (~0.4% ulp) in both
    # kernel and reference, but accumulation orders differ.
    np.testing.assert_allclose(np.asarray(s), np.asarray(s_ref), rtol=1e-2, atol=1e-2)
    np.testing.assert_allclose(np.asarray(p), np.asarray(p_ref), rtol=1e-2, atol=1e-2)

    print("KERNEL_OK")
</pallas_src>

<mosaic_0001>
module attributes {stable_mosaic.version = 11 : i64} {
  func.func @_conv1_band_kernel(%arg0: i32, %arg1: i32, %arg2: memref<1x16x128xbf16, #tpu.memory_space<vmem>>, %arg3: memref<1x16x128xbf16, #tpu.memory_space<vmem>>, %arg4: memref<1x16x128xbf16, #tpu.memory_space<vmem>>, %arg5: memref<3x128x128xbf16, #tpu.memory_space<vmem>>, %arg6: memref<1x16x128xbf16, #tpu.memory_space<vmem>>, %arg7: memref<1x1x2x128xf32, #tpu.memory_space<vmem>>) attributes {dimension_semantics = [#tpu.dimension_semantics<parallel>, #tpu.dimension_semantics<parallel>], iteration_bounds = array<i64: 2, 1>, scalar_prefetch = 0 : i64, scratch_operands = 0 : i64, tpu.core_type = #tpu.core_type<tc>, window_params = [{transform_indices = @transform_0, window_bounds = array<i64: 1, 16, 128>}, {transform_indices = @transform_1, window_bounds = array<i64: 1, 16, 128>}, {transform_indices = @transform_2, window_bounds = array<i64: 1, 16, 128>}, {pipeline_mode = #tpu.pipeline_mode<synchronous>, transform_indices = @transform_3, window_bounds = array<i64: 3, 128, 128>}, {transform_indices = @transform_4, window_bounds = array<i64: 1, 16, 128>}, {transform_indices = @transform_5, window_bounds = array<i64: 1, 1, 2, 128>}]} {
    %c0 = arith.constant 0 : index
    %c0_0 = arith.constant 0 : index
    %c0_1 = arith.constant 0 : index
    %0 = vector.load %arg3[%c0, %c0_0, %c0_1] : memref<1x16x128xbf16, #tpu.memory_space<vmem>>, vector<1x16x128xbf16>
    %1 = vector.shape_cast %0 : vector<1x16x128xbf16> to vector<16x128xbf16>
    %2 = arith.extf %1 : vector<16x128xbf16> to vector<16x128xf32>
    %c0_i32 = arith.constant 0 : i32
    %3 = arith.cmpi sgt, %arg1, %c0_i32 : i32
    %c0_2 = arith.constant 0 : index
    %c15 = arith.constant 15 : index
    %c0_3 = arith.constant 0 : index
    %4 = vector.load %arg2[%c0_2, %c15, %c0_3] : memref<1x16x128xbf16, #tpu.memory_space<vmem>>, vector<1x1x128xbf16>
    %5 = vector.shape_cast %4 : vector<1x1x128xbf16> to vector<1x128xbf16>
    %6 = arith.extf %5 : vector<1x128xbf16> to vector<1x128xf32>
    %cst = arith.constant 0.000000e+00 : f32
    %7 = vector.broadcast %cst : f32 to vector<1x128xf32>
    %8 = arith.select %3, %6, %7 : vector<1x128xf32>
    %c0_i32_4 = arith.constant 0 : i32
    %9 = arith.cmpi slt, %arg1, %c0_i32_4 : i32
    %c0_5 = arith.constant 0 : index
    %c0_6 = arith.constant 0 : index
    %c0_7 = arith.constant 0 : index
    %10 = vector.load %arg4[%c0_5, %c0_6, %c0_7] : memref<1x16x128xbf16, #tpu.memory_space<vmem>>, vector<1x1x128xbf16>
    %11 = vector.shape_cast %10 : vector<1x1x128xbf16> to vector<1x128xbf16>
    %12 = arith.extf %11 : vector<1x128xbf16> to vector<1x128xf32>
    %cst_8 = arith.constant 0.000000e+00 : f32
    %13 = vector.broadcast %cst_8 : f32 to vector<1x128xf32>
    %14 = arith.select %9, %12, %13 : vector<1x128xf32>
    %15 = vector.extract_strided_slice %2 {offsets = [0, 0], sizes = [15, 128], strides = [1, 1]} : vector<16x128xf32> to vector<15x128xf32>
    %16 = tpu.concatenate %8, %15 in 0 : vector<1x128xf32>, vector<15x128xf32> -> vector<16x128xf32>
    %17 = arith.truncf %16 : vector<16x128xf32> to vector<16x128xbf16>
    %18 = arith.truncf %2 : vector<16x128xf32> to vector<16x128xbf16>
    %19 = vector.extract_strided_slice %2 {offsets = [1, 0], sizes = [15, 128], strides = [1, 1]} : vector<16x128xf32> to vector<15x128xf32>
    %20 = tpu.concatenate %19, %14 in 0 : vector<15x128xf32>, vector<1x128xf32> -> vector<16x128xf32>
    %21 = arith.truncf %20 : vector<16x128xf32> to vector<16x128xbf16>
    %c0_9 = arith.constant 0 : index
    %c0_10 = arith.constant 0 : index
    %c0_11 = arith.constant 0 : index
    %22 = vector.load %arg5[%c0_9, %c0_10, %c0_11] : memref<3x128x128xbf16, #tpu.memory_space<vmem>>, vector<1x128x128xbf16>
    %23 = vector.shape_cast %22 : vector<1x128x128xbf16> to vector<128x128xbf16>
    %cst_12 = arith.constant dense<0.000000e+00> : vector<16x128xf32>
    %24 = tpu.matmul %17, %23, %cst_12 {dimension_numbers = #tpu.dot_dimension_numbers<[1], [0], [0], [1], [0, 0, 1, 1], [], []>} : vector<16x128xbf16>, vector<128x128xbf16>, vector<16x128xf32> -> vector<16x128xf32>
    %c1 = arith.constant 1 : index
    %c0_13 = arith.constant 0 : index
    %c0_14 = arith.constant 0 : index
    %25 = vector.load %arg5[%c1, %c0_13, %c0_14] : memref<3x128x128xbf16, #tpu.memory_space<vmem>>, vector<1x128x128xbf16>
    %26 = vector.shape_cast %25 : vector<1x128x128xbf16> to vector<128x128xbf16>
    %cst_15 = arith.constant dense<0.000000e+00> : vector<16x128xf32>
    %27 = tpu.matmul %18, %26, %cst_15 {dimension_numbers = #tpu.dot_dimension_numbers<[1], [0], [0], [1], [0, 0, 1, 1], [], []>} : vector<16x128xbf16>, vector<128x128xbf16>, vector<16x128xf32> -> vector<16x128xf32>
    %28 = arith.addf %24, %27 : vector<16x128xf32>
    %c2 = arith.constant 2 : index
    %c0_16 = arith.constant 0 : index
    %c0_17 = arith.constant 0 : index
    %29 = vector.load %arg5[%c2, %c0_16, %c0_17] : memref<3x128x128xbf16, #tpu.memory_space<vmem>>, vector<1x128x128xbf16>
    %30 = vector.shape_cast %29 : vector<1x128x128xbf16> to vector<128x128xbf16>
    %cst_18 = arith.constant dense<0.000000e+00> : vector<16x128xf32>
    %31 = tpu.matmul %21, %30, %cst_18 {dimension_numbers = #tpu.dot_dimension_numbers<[1], [0], [0], [1], [0, 0, 1, 1], [], []>} : vector<16x128xbf16>, vector<128x128xbf16>, vector<16x128xf32> -> vector<16x128xf32>
    %32 = arith.addf %28, %31 : vector<16x128xf32>
    %33 = arith.truncf %32 : vector<16x128xf32> to vector<16x128xbf16>
    %c0_19 = arith.constant 0 : index
    %c0_20 = arith.constant 0 : index
    %c0_21 = arith.constant 0 : index
    %34 = vector.load %arg6[%c0_19, %c0_20, %c0_21] : memref<1x16x128xbf16, #tpu.memory_space<vmem>>, vector<1x16x128xbf16>
    %35 = vector.shape_cast %34 : vector<1x16x128xbf16> to vector<16x128xbf16>
    %36 = vector.shape_cast %33 : vector<16x128xbf16> to vector<1x16x128xbf16>
    tpu.vector_store %arg6[%c0_19, %c0_20, %c0_21], %36 {strides = array<i32>} : memref<1x16x128xbf16, #tpu.memory_space<vmem>>, vector<1x16x128xbf16>,
    %37 = arith.extf %33 : vector<16x128xbf16> to vector<16x128xf32>
    %cst_22 = arith.constant dense<0.000000e+00> : vector<128xf32>
    %38 = vector.multi_reduction <add>, %37, %cst_22 [0] : vector<16x128xf32> to vector<128xf32>
    %39 = vector.shape_cast %38 : vector<128xf32> to vector<1x128xf32>
    %40 = arith.mulf %37, %37 : vector<16x128xf32>
    %cst_23 = arith.constant dense<0.000000e+00> : vector<128xf32>
    %41 = vector.multi_reduction <add>, %40, %cst_23 [0] : vector<16x128xf32> to vector<128xf32>
    %42 = vector.shape_cast %41 : vector<128xf32> to vector<1x128xf32>
    %43 = tpu.concatenate %39, %42 in 0 : vector<1x128xf32>, vector<1x128xf32> -> vector<2x128xf32>
    %c0_24 = arith.constant 0 : index
    %c0_25 = arith.constant 0 : index
    %c0_26 = arith.constant 0 : index
    %c0_27 = arith.constant 0 : index
    %44 = vector.load %arg7[%c0_24, %c0_25, %c0_26, %c0_27] : memref<1x1x2x128xf32, #tpu.memory_space<vmem>>, vector<1x1x2x128xf32>
    %45 = vector.shape_cast %44 : vector<1x1x2x128xf32> to vector<2x128xf32>
    %46 = vector.shape_cast %43 : vector<2x128xf32> to vector<1x1x2x128xf32>
    tpu.vector_store %arg7[%c0_24, %c0_25, %c0_26, %c0_27], %46 {strides = array<i32>} : memref<1x1x2x128xf32, #tpu.memory_space<vmem>>, vector<1x1x2x128xf32>,
    return
  }
  func.func @transform_0(%arg0: i32, %arg1: i32) -> (i32, i32, i32) {
    %c1_i32 = arith.constant 1 : i32
    %0 = arith.muli %arg1, %c1_i32 : i32
    %c1_i32_0 = arith.constant 1 : i32
    %1 = arith.subi %0, %c1_i32_0 : i32
    %c0_i32 = arith.constant 0 : i32
    %2 = arith.maxsi %1, %c0_i32 : i32
    %c0_i32_1 = arith.constant 0 : i32
    %c0_i32_2 = arith.constant 0 : i32
    return %arg0, %2, %c0_i32_1 : i32, i32, i32
  }
  func.func @transform_1(%arg0: i32, %arg1: i32) -> (i32, i32, i32) {
    %c0_i32 = arith.constant 0 : i32
    %c0_i32_0 = arith.constant 0 : i32
    return %arg0, %arg1, %c0_i32 : i32, i32, i32
  }
  func.func @transform_2(%arg0: i32, %arg1: i32) -> (i32, i32, i32) {
    %c1_i32 = arith.constant 1 : i32
    %0 = arith.addi %arg1, %c1_i32 : i32
    %c1_i32_0 = arith.constant 1 : i32
    %1 = arith.muli %0, %c1_i32_0 : i32
    %c0_i32 = arith.constant 0 : i32
    %2 = arith.minsi %1, %c0_i32 : i32
    %c0_i32_1 = arith.constant 0 : i32
    %c0_i32_2 = arith.constant 0 : i32
    return %arg0, %2, %c0_i32_1 : i32, i32, i32
  }
  func.func @transform_3(%arg0: i32, %arg1: i32) -> (i32, i32, i32) {
    %c0_i32 = arith.constant 0 : i32
    %c0_i32_0 = arith.constant 0 : i32
    %c0_i32_1 = arith.constant 0 : i32
    %c0_i32_2 = arith.constant 0 : i32
    return %c0_i32, %c0_i32_0, %c0_i32_1 : i32, i32, i32
  }
  func.func @transform_4(%arg0: i32, %arg1: i32) -> (i32, i32, i32) {
    %c0_i32 = arith.constant 0 : i32
    %c0_i32_0 = arith.constant 0 : i32
    return %arg0, %arg1, %c0_i32 : i32, i32, i32
  }
  func.func @transform_5(%arg0: i32, %arg1: i32) -> (i32, i32, i32, i32) {
    %c0_i32 = arith.constant 0 : i32
    %c0_i32_0 = arith.constant 0 : i32
    %c0_i32_1 = arith.constant 0 : i32
    return %arg0, %arg1, %c0_i32, %c0_i32_0 : i32, i32, i32, i32
  }
}

module attributes {stable_mosaic.version = 11 : i64} {
  func.func @_conv2_band_kernel(%arg0: i32, %arg1: i32, %arg2: memref<1x16x128xbf16, #tpu.memory_space<vmem>>, %arg3: memref<1x16x128xbf16, #tpu.memory_space<vmem>>, %arg4: memref<1x16x128xbf16, #tpu.memory_space<vmem>>, %arg5: memref<1x128xf32, #tpu.memory_space<vmem>>, %arg6: memref<1x128xf32, #tpu.memory_space<vmem>>, %arg7: memref<3x128x128xbf16, #tpu.memory_space<vmem>>, %arg8: memref<1x16x128xbf16, #tpu.memory_space<vmem>>, %arg9: memref<1x1x2x128xf32, #tpu.memory_space<vmem>>) attributes {dimension_semantics = [#tpu.dimension_semantics<parallel>, #tpu.dimension_semantics<parallel>], iteration_bounds = array<i64: 2, 1>, scalar_prefetch = 0 : i64, scratch_operands = 0 : i64, tpu.core_type = #tpu.core_type<tc>, window_params = [{transform_indices = @transform_0, window_bounds = array<i64: 1, 16, 128>}, {transform_indices = @transform_1, window_bounds = array<i64: 1, 16, 128>}, {transform_indices = @transform_2, window_bounds = array<i64: 1, 16, 128>}, {pipeline_mode = #tpu.pipeline_mode<synchronous>, transform_indices = @transform_3, window_bounds = array<i64: 1, 128>}, {pipeline_mode = #tpu.pipeline_mode<synchronous>, transform_indices = @transform_4, window_bounds = array<i64: 1, 128>}, {pipeline_mode = #tpu.pipeline_mode<synchronous>, transform_indices = @transform_5, window_bounds = array<i64: 3, 128, 128>}, {transform_indices = @transform_6, window_bounds = array<i64: 1, 16, 128>}, {transform_indices = @transform_7, window_bounds = array<i64: 1, 1, 2, 128>}]} {
    %c0 = arith.constant 0 : index
    %c0_0 = arith.constant 0 : index
    %0 = vector.load %arg5[%c0, %c0_0] : memref<1x128xf32, #tpu.memory_space<vmem>>, vector<1x128xf32>
    %c0_1 = arith.constant 0 : index
    %c0_2 = arith.constant 0 : index
    %1 = vector.load %arg6[%c0_1, %c0_2] : memref<1x128xf32, #tpu.memory_space<vmem>>, vector<1x128xf32>
    %c0_3 = arith.constant 0 : index
    %c0_4 = arith.constant 0 : index
    %c0_5 = arith.constant 0 : index
    %2 = vector.load %arg3[%c0_3, %c0_4, %c0_5] : memref<1x16x128xbf16, #tpu.memory_space<vmem>>, vector<1x16x128xbf16>
    %3 = vector.shape_cast %2 : vector<1x16x128xbf16> to vector<16x128xbf16>
    %4 = arith.extf %3 : vector<16x128xbf16> to vector<16x128xf32>
    %5 = vector.broadcast %0 : vector<1x128xf32> to vector<16x128xf32>
    %6 = arith.mulf %4, %5 : vector<16x128xf32>
    %7 = vector.broadcast %1 : vector<1x128xf32> to vector<16x128xf32>
    %8 = arith.addf %6, %7 : vector<16x128xf32>
    %cst = arith.constant 0.000000e+00 : f32
    %9 = vector.broadcast %cst : f32 to vector<16x128xf32>
    %10 = arith.maximumf %8, %9 : vector<16x128xf32>
    %c0_i32 = arith.constant 0 : i32
    %11 = arith.cmpi sgt, %arg1, %c0_i32 : i32
    %c0_6 = arith.constant 0 : index
    %c15 = arith.constant 15 : index
    %c0_7 = arith.constant 0 : index
    %12 = vector.load %arg2[%c0_6, %c15, %c0_7] : memref<1x16x128xbf16, #tpu.memory_space<vmem>>, vector<1x1x128xbf16>
    %13 = vector.shape_cast %12 : vector<1x1x128xbf16> to vector<1x128xbf16>
    %14 = arith.extf %13 : vector<1x128xbf16> to vector<1x128xf32>
    %15 = arith.mulf %14, %0 : vector<1x128xf32>
    %16 = arith.addf %15, %1 : vector<1x128xf32>
    %cst_8 = arith.constant 0.000000e+00 : f32
    %17 = vector.broadcast %cst_8 : f32 to vector<1x128xf32>
    %18 = arith.maximumf %16, %17 : vector<1x128xf32>
    %cst_9 = arith.constant 0.000000e+00 : f32
    %19 = vector.broadcast %cst_9 : f32 to vector<1x128xf32>
    %20 = arith.select %11, %18, %19 : vector<1x128xf32>
    %c0_i32_10 = arith.constant 0 : i32
    %21 = arith.cmpi slt, %arg1, %c0_i32_10 : i32
    %c0_11 = arith.constant 0 : index
    %c0_12 = arith.constant 0 : index
    %c0_13 = arith.constant 0 : index
    %22 = vector.load %arg4[%c0_11, %c0_12, %c0_13] : memref<1x16x128xbf16, #tpu.memory_space<vmem>>, vector<1x1x128xbf16>
    %23 = vector.shape_cast %22 : vector<1x1x128xbf16> to vector<1x128xbf16>
    %24 = arith.extf %23 : vector<1x128xbf16> to vector<1x128xf32>
    %25 = arith.mulf %24, %0 : vector<1x128xf32>
    %26 = arith.addf %25, %1 : vector<1x128xf32>
    %cst_14 = arith.constant 0.000000e+00 : f32
    %27 = vector.broadcast %cst_14 : f32 to vector<1x128xf32>
    %28 = arith.maximumf %26, %27 : vector<1x128xf32>
    %cst_15 = arith.constant 0.000000e+00 : f32
    %29 = vector.broadcast %cst_15 : f32 to vector<1x128xf32>
    %30 = arith.select %21, %28, %29 : vector<1x128xf32>
    %31 = vector.extract_strided_slice %10 {offsets = [0, 0], sizes = [15, 128], strides = [1, 1]} : vector<16x128xf32> to vector<15x128xf32>
    %32 = tpu.concatenate %20, %31 in 0 : vector<1x128xf32>, vector<15x128xf32> -> vector<16x128xf32>
    %33 = arith.truncf %32 : vector<16x128xf32> to vector<16x128xbf16>
    %34 = arith.truncf %10 : vector<16x128xf32> to vector<16x128xbf16>
    %35 = vector.extract_strided_slice %10 {offsets = [1, 0], sizes = [15, 128], strides = [1, 1]} : vector<16x128xf32> to vector<15x128xf32>
    %36 = tpu.concatenate %35, %30 in 0 : vector<15x128xf32>, vector<1x128xf32> -> vector<16x128xf32>
    %37 = arith.truncf %36 : vector<16x128xf32> to vector<16x128xbf16>
    %c0_16 = arith.constant 0 : index
    %c0_17 = arith.constant 0 : index
    %c0_18 = arith.constant 0 : index
    %38 = vector.load %arg7[%c0_16, %c0_17, %c0_18] : memref<3x128x128xbf16, #tpu.memory_space<vmem>>, vector<1x128x128xbf16>
    %39 = vector.shape_cast %38 : vector<1x128x128xbf16> to vector<128x128xbf16>
    %cst_19 = arith.constant dense<0.000000e+00> : vector<16x128xf32>
    %40 = tpu.matmul %33, %39, %cst_19 {dimension_numbers = #tpu.dot_dimension_numbers<[1], [0], [0], [1], [0, 0, 1, 1], [], []>} : vector<16x128xbf16>, vector<128x128xbf16>, vector<16x128xf32> -> vector<16x128xf32>
    %c1 = arith.constant 1 : index
    %c0_20 = arith.constant 0 : index
    %c0_21 = arith.constant 0 : index
    %41 = vector.load %arg7[%c1, %c0_20, %c0_21] : memref<3x128x128xbf16, #tpu.memory_space<vmem>>, vector<1x128x128xbf16>
    %42 = vector.shape_cast %41 : vector<1x128x128xbf16> to vector<128x128xbf16>
    %cst_22 = arith.constant dense<0.000000e+00> : vector<16x128xf32>
    %43 = tpu.matmul %34, %42, %cst_22 {dimension_numbers = #tpu.dot_dimension_numbers<[1], [0], [0], [1], [0, 0, 1, 1], [], []>} : vector<16x128xbf16>, vector<128x128xbf16>, vector<16x128xf32> -> vector<16x128xf32>
    %44 = arith.addf %40, %43 : vector<16x128xf32>
    %c2 = arith.constant 2 : index
    %c0_23 = arith.constant 0 : index
    %c0_24 = arith.constant 0 : index
    %45 = vector.load %arg7[%c2, %c0_23, %c0_24] : memref<3x128x128xbf16, #tpu.memory_space<vmem>>, vector<1x128x128xbf16>
    %46 = vector.shape_cast %45 : vector<1x128x128xbf16> to vector<128x128xbf16>
    %cst_25 = arith.constant dense<0.000000e+00> : vector<16x128xf32>
    %47 = tpu.matmul %37, %46, %cst_25 {dimension_numbers = #tpu.dot_dimension_numbers<[1], [0], [0], [1], [0, 0, 1, 1], [], []>} : vector<16x128xbf16>, vector<128x128xbf16>, vector<16x128xf32> -> vector<16x128xf32>
    %48 = arith.addf %44, %47 : vector<16x128xf32>
    %49 = arith.truncf %48 : vector<16x128xf32> to vector<16x128xbf16>
    %c0_26 = arith.constant 0 : index
    %c0_27 = arith.constant 0 : index
    %c0_28 = arith.constant 0 : index
    %50 = vector.load %arg8[%c0_26, %c0_27, %c0_28] : memref<1x16x128xbf16, #tpu.memory_space<vmem>>, vector<1x16x128xbf16>
    %51 = vector.shape_cast %50 : vector<1x16x128xbf16> to vector<16x128xbf16>
    %52 = vector.shape_cast %49 : vector<16x128xbf16> to vector<1x16x128xbf16>
    tpu.vector_store %arg8[%c0_26, %c0_27, %c0_28], %52 {strides = array<i32>} : memref<1x16x128xbf16, #tpu.memory_space<vmem>>, vector<1x16x128xbf16>,
    %53 = arith.extf %49 : vector<16x128xbf16> to vector<16x128xf32>
    %cst_29 = arith.constant dense<0.000000e+00> : vector<128xf32>
    %54 = vector.multi_reduction <add>, %53, %cst_29 [0] : vector<16x128xf32> to vector<128xf32>
    %55 = vector.shape_cast %54 : vector<128xf32> to vector<1x128xf32>
    %56 = arith.mulf %53, %53 : vector<16x128xf32>
    %cst_30 = arith.constant dense<0.000000e+00> : vector<128xf32>
    %57 = vector.multi_reduction <add>, %56, %cst_30 [0] : vector<16x128xf32> to vector<128xf32>
    %58 = vector.shape_cast %57 : vector<128xf32> to vector<1x128xf32>
    %59 = tpu.concatenate %55, %58 in 0 : vector<1x128xf32>, vector<1x128xf32> -> vector<2x128xf32>
    %c0_31 = arith.constant 0 : index
    %c0_32 = arith.constant 0 : index
    %c0_33 = arith.constant 0 : index
    %c0_34 = arith.constant 0 : index
    %60 = vector.load %arg9[%c0_31, %c0_32, %c0_33, %c0_34] : memref<1x1x2x128xf32, #tpu.memory_space<vmem>>, vector<1x1x2x128xf32>
    %61 = vector.shape_cast %60 : vector<1x1x2x128xf32> to vector<2x128xf32>
    %62 = vector.shape_cast %59 : vector<2x128xf32> to vector<1x1x2x128xf32>
    tpu.vector_store %arg9[%c0_31, %c0_32, %c0_33, %c0_34], %62 {strides = array<i32>} : memref<1x1x2x128xf32, #tpu.memory_space<vmem>>, vector<1x1x2x128xf32>,
    return
  }
  func.func @transform_0(%arg0: i32, %arg1: i32) -> (i32, i32, i32) {
    %c1_i32 = arith.constant 1 : i32
    %0 = arith.muli %arg1, %c1_i32 : i32
    %c1_i32_0 = arith.constant 1 : i32
    %1 = arith.subi %0, %c1_i32_0 : i32
    %c0_i32 = arith.constant 0 : i32
    %2 = arith.maxsi %1, %c0_i32 : i32
    %c0_i32_1 = arith.constant 0 : i32
    %c0_i32_2 = arith.constant 0 : i32
    return %arg0, %2, %c0_i32_1 : i32, i32, i32
  }
  func.func @transform_1(%arg0: i32, %arg1: i32) -> (i32, i32, i32) {
    %c0_i32 = arith.constant 0 : i32
    %c0_i32_0 = arith.constant 0 : i32
    return %arg0, %arg1, %c0_i32 : i32, i32, i32
  }
  func.func @transform_2(%arg0: i32, %arg1: i32) -> (i32, i32, i32) {
    %c1_i32 = arith.constant 1 : i32
    %0 = arith.addi %arg1, %c1_i32 : i32
    %c1_i32_0 = arith.constant 1 : i32
    %1 = arith.muli %0, %c1_i32_0 : i32
    %c0_i32 = arith.constant 0 : i32
    %2 = arith.minsi %1, %c0_i32 : i32
    %c0_i32_1 = arith.constant 0 : i32
    %c0_i32_2 = arith.constant 0 : i32
    return %arg0, %2, %c0_i32_1 : i32, i32, i32
  }
  func.func @transform_3(%arg0: i32, %arg1: i32) -> (i32, i32) {
    %c0_i32 = arith.constant 0 : i32
    %c0_i32_0 = arith.constant 0 : i32
    %c0_i32_1 = arith.constant 0 : i32
    return %c0_i32, %c0_i32_0 : i32, i32
  }
  func.func @transform_4(%arg0: i32, %arg1: i32) -> (i32, i32) {
    %c0_i32 = arith.constant 0 : i32
    %c0_i32_0 = arith.constant 0 : i32
    %c0_i32_1 = arith.constant 0 : i32
    return %c0_i32, %c0_i32_0 : i32, i32
  }
  func.func @transform_5(%arg0: i32, %arg1: i32) -> (i32, i32, i32) {
    %c0_i32 = arith.constant 0 : i32
    %c0_i32_0 = arith.constant 0 : i32
    %c0_i32_1 = arith.constant 0 : i32
    %c0_i32_2 = arith.constant 0 : i32
    return %c0_i32, %c0_i32_0, %c0_i32_1 : i32, i32, i32
  }
  func.func @transform_6(%arg0: i32, %arg1: i32) -> (i32, i32, i32) {
    %c0_i32 = arith.constant 0 : i32
    %c0_i32_0 = arith.constant 0 : i32
    return %arg0, %arg1, %c0_i32 : i32, i32, i32
  }
  func.func @transform_7(%arg0: i32, %arg1: i32) -> (i32, i32, i32, i32) {
    %c0_i32 = arith.constant 0 : i32
    %c0_i32_0 = arith.constant 0 : i32
    %c0_i32_1 = arith.constant 0 : i32
    return %arg0, %arg1, %c0_i32, %c0_i32_0 : i32, i32, i32, i32
  }
}

module attributes {stable_mosaic.version = 11 : i64} {
  func.func @_bn_relu_pool_kernel(%arg0: i32, %arg1: i32, %arg2: memref<1x16x128xbf16, #tpu.memory_space<vmem>>, %arg3: memref<1x128xf32, #tpu.memory_space<vmem>>, %arg4: memref<1x128xf32, #tpu.memory_space<vmem>>, %arg5: memref<4x128x128xf32, #tpu.memory_space<vmem>>, %arg6: memref<1x16x128xf32, #tpu.memory_space<vmem>>, %arg7: memref<1x4x128xf32, #tpu.memory_space<vmem>>) attributes {dimension_semantics = [#tpu.dimension_semantics<parallel>, #tpu.dimension_semantics<parallel>], iteration_bounds = array<i64: 2, 1>, scalar_prefetch = 0 : i64, scratch_operands = 0 : i64, tpu.core_type = #tpu.core_type<tc>, window_params = [{transform_indices = @transform_0, window_bounds = array<i64: 1, 16, 128>}, {pipeline_mode = #tpu.pipeline_mode<synchronous>, transform_indices = @transform_1, window_bounds = array<i64: 1, 128>}, {pipeline_mode = #tpu.pipeline_mode<synchronous>, transform_indices = @transform_2, window_bounds = array<i64: 1, 128>}, {pipeline_mode = #tpu.pipeline_mode<synchronous>, transform_indices = @transform_3, window_bounds = array<i64: 4, 128, 128>}, {transform_indices = @transform_4, window_bounds = array<i64: 1, 16, 128>}, {transform_indices = @transform_5, window_bounds = array<i64: 1, 4, 128>}]} {
    %c0 = arith.constant 0 : index
    %c0_0 = arith.constant 0 : index
    %0 = vector.load %arg3[%c0, %c0_0] : memref<1x128xf32, #tpu.memory_space<vmem>>, vector<1x128xf32>
    %c0_1 = arith.constant 0 : index
    %c0_2 = arith.constant 0 : index
    %1 = vector.load %arg4[%c0_1, %c0_2] : memref<1x128xf32, #tpu.memory_space<vmem>>, vector<1x128xf32>
    %c0_3 = arith.constant 0 : index
    %c0_4 = arith.constant 0 : index
    %c0_5 = arith.constant 0 : index
    %2 = vector.load %arg2[%c0_3, %c0_4, %c0_5] : memref<1x16x128xbf16, #tpu.memory_space<vmem>>, vector<1x16x128xbf16>
    %3 = vector.shape_cast %2 : vector<1x16x128xbf16> to vector<16x128xbf16>
    %4 = arith.extf %3 : vector<16x128xbf16> to vector<16x128xf32>
    %5 = vector.broadcast %0 : vector<1x128xf32> to vector<16x128xf32>
    %6 = arith.mulf %4, %5 : vector<16x128xf32>
    %7 = vector.broadcast %1 : vector<1x128xf32> to vector<16x128xf32>
    %8 = arith.addf %6, %7 : vector<16x128xf32>
    %cst = arith.constant 0.000000e+00 : f32
    %9 = vector.broadcast %cst : f32 to vector<16x128xf32>
    %10 = arith.maximumf %8, %9 : vector<16x128xf32>
    %c0_6 = arith.constant 0 : index
    %c0_7 = arith.constant 0 : index
    %c0_8 = arith.constant 0 : index
    %11 = vector.load %arg6[%c0_6, %c0_7, %c0_8] : memref<1x16x128xf32, #tpu.memory_space<vmem>>, vector<1x16x128xf32>
    %12 = vector.shape_cast %11 : vector<1x16x128xf32> to vector<16x128xf32>
    %13 = vector.shape_cast %10 : vector<16x128xf32> to vector<1x16x128xf32>
    tpu.vector_store %arg6[%c0_6, %c0_7, %c0_8], %13 {strides = array<i32>} : memref<1x16x128xf32, #tpu.memory_space<vmem>>, vector<1x16x128xf32>,
    %14 = vector.shape_cast %10 : vector<16x128xf32> to vector<4x4x128xf32>
    %15 = vector.extract_strided_slice %14 {offsets = [0, 0, 0], sizes = [4, 2, 128], strides = [1, 1, 1]} : vector<4x4x128xf32> to vector<4x2x128xf32>
    %cst_9 = arith.constant dense<0xFF800000> : vector<4x128xf32>
    %16 = vector.multi_reduction <maximumf>, %15, %cst_9 [1] : vector<4x2x128xf32> to vector<4x128xf32>
    %17 = vector.extract_strided_slice %14 {offsets = [0, 2, 0], sizes = [4, 2, 128], strides = [1, 1, 1]} : vector<4x4x128xf32> to vector<4x2x128xf32>
    %cst_10 = arith.constant dense<0xFF800000> : vector<4x128xf32>
    %18 = vector.multi_reduction <maximumf>, %17, %cst_10 [1] : vector<4x2x128xf32> to vector<4x128xf32>
    %c0_11 = arith.constant 0 : index
    %c0_12 = arith.constant 0 : index
    %c0_13 = arith.constant 0 : index
    %19 = vector.load %arg5[%c0_11, %c0_12, %c0_13] : memref<4x128x128xf32, #tpu.memory_space<vmem>>, vector<1x128x128xf32>
    %20 = vector.shape_cast %19 : vector<1x128x128xf32> to vector<128x128xf32>
    %cst_14 = arith.constant dense<0.000000e+00> : vector<4x128xf32>
    %21 = tpu.matmul %16, %20, %cst_14 {dimension_numbers = #tpu.dot_dimension_numbers<[1], [0], [0], [1], [0, 0, 1, 1], [], []>} : vector<4x128xf32>, vector<128x128xf32>, vector<4x128xf32> -> vector<4x128xf32>
    %c1 = arith.constant 1 : index
    %c0_15 = arith.constant 0 : index
    %c0_16 = arith.constant 0 : index
    %22 = vector.load %arg5[%c1, %c0_15, %c0_16] : memref<4x128x128xf32, #tpu.memory_space<vmem>>, vector<1x128x128xf32>
    %23 = vector.shape_cast %22 : vector<1x128x128xf32> to vector<128x128xf32>
    %cst_17 = arith.constant dense<0.000000e+00> : vector<4x128xf32>
    %24 = tpu.matmul %16, %23, %cst_17 {dimension_numbers = #tpu.dot_dimension_numbers<[1], [0], [0], [1], [0, 0, 1, 1], [], []>} : vector<4x128xf32>, vector<128x128xf32>, vector<4x128xf32> -> vector<4x128xf32>
    %25 = arith.maximumf %21, %24 : vector<4x128xf32>
    %c2 = arith.constant 2 : index
    %c0_18 = arith.constant 0 : index
    %c0_19 = arith.constant 0 : index
    %26 = vector.load %arg5[%c2, %c0_18, %c0_19] : memref<4x128x128xf32, #tpu.memory_space<vmem>>, vector<1x128x128xf32>
    %27 = vector.shape_cast %26 : vector<1x128x128xf32> to vector<128x128xf32>
    %cst_20 = arith.constant dense<0.000000e+00> : vector<4x128xf32>
    %28 = tpu.matmul %18, %27, %cst_20 {dimension_numbers = #tpu.dot_dimension_numbers<[1], [0], [0], [1], [0, 0, 1, 1], [], []>} : vector<4x128xf32>, vector<128x128xf32>, vector<4x128xf32> -> vector<4x128xf32>
    %c3 = arith.constant 3 : index
    %c0_21 = arith.constant 0 : index
    %c0_22 = arith.constant 0 : index
    %29 = vector.load %arg5[%c3, %c0_21, %c0_22] : memref<4x128x128xf32, #tpu.memory_space<vmem>>, vector<1x128x128xf32>
    %30 = vector.shape_cast %29 : vector<1x128x128xf32> to vector<128x128xf32>
    %cst_23 = arith.constant dense<0.000000e+00> : vector<4x128xf32>
    %31 = tpu.matmul %18, %30, %cst_23 {dimension_numbers = #tpu.dot_dimension_numbers<[1], [0], [0], [1], [0, 0, 1, 1], [], []>} : vector<4x128xf32>, vector<128x128xf32>, vector<4x128xf32> -> vector<4x128xf32>
    %32 = arith.maximumf %28, %31 : vector<4x128xf32>
    %33 = arith.addf %25, %32 : vector<4x128xf32>
    %c0_24 = arith.constant 0 : index
    %c0_25 = arith.constant 0 : index
    %c0_26 = arith.constant 0 : index
    %34 = vector.load %arg7[%c0_24, %c0_25, %c0_26] : memref<1x4x128xf32, #tpu.memory_space<vmem>>, vector<1x4x128xf32>
    %35 = vector.shape_cast %34 : vector<1x4x128xf32> to vector<4x128xf32>
    %36 = vector.shape_cast %33 : vector<4x128xf32> to vector<1x4x128xf32>
    tpu.vector_store %arg7[%c0_24, %c0_25, %c0_26], %36 {strides = array<i32>} : memref<1x4x128xf32, #tpu.memory_space<vmem>>, vector<1x4x128xf32>,
    return
  }
  func.func @transform_0(%arg0: i32, %arg1: i32) -> (i32, i32, i32) {
    %c0_i32 = arith.constant 0 : i32
    %c0_i32_0 = arith.constant 0 : i32
    return %arg0, %arg1, %c0_i32 : i32, i32, i32
  }
  func.func @transform_1(%arg0: i32, %arg1: i32) -> (i32, i32) {
    %c0_i32 = arith.constant 0 : i32
    %c0_i32_0 = arith.constant 0 : i32
    %c0_i32_1 = arith.constant 0 : i32
    return %c0_i32, %c0_i32_0 : i32, i32
  }
  func.func @transform_2(%arg0: i32, %arg1: i32) -> (i32, i32) {
    %c0_i32 = arith.constant 0 : i32
    %c0_i32_0 = arith.constant 0 : i32
    %c0_i32_1 = arith.constant 0 : i32
    return %c0_i32, %c0_i32_0 : i32, i32
  }
  func.func @transform_3(%arg0: i32, %arg1: i32) -> (i32, i32, i32) {
    %c0_i32 = arith.constant 0 : i32
    %c0_i32_0 = arith.constant 0 : i32
    %c0_i32_1 = arith.constant 0 : i32
    %c0_i32_2 = arith.constant 0 : i32
    return %c0_i32, %c0_i32_0, %c0_i32_1 : i32, i32, i32
  }
  func.func @transform_4(%arg0: i32, %arg1: i32) -> (i32, i32, i32) {
    %c0_i32 = arith.constant 0 : i32
    %c0_i32_0 = arith.constant 0 : i32
    return %arg0, %arg1, %c0_i32 : i32, i32, i32
  }
  func.func @transform_5(%arg0: i32, %arg1: i32) -> (i32, i32, i32) {
    %c0_i32 = arith.constant 0 : i32
    %c0_i32_0 = arith.constant 0 : i32
    return %arg0, %arg1, %c0_i32 : i32, i32, i32
  }
}

</mosaic_0001>

<bundles_post_ra>
// kernel: tile.28
= control target key start
LH: loop header
LB: loop body
LE: loop exit
PB: predicated region body
PF: predicated region fallthrough
CT: control target
= control target key end

     0   :  { %s28_s0 = inlined_call_operand.vmem [shape: f32[8], index: 0, kind: input, shape index: {}]   ;;  %s29_s1 = inlined_call_operand.vmem [shape: f32[16,8], index: 1, kind: output, shape index: {}]  }
   0x1   :  { %v4_v0 = vld [vmem:[%s28_s0] ss:$0 sm:$0xff] }
   0x2   :  { %5 = vst [vmem:[%s29_s1] sm:$0xff] %v4_v0 }
   0x3   :  { %8 = vst [vmem:[%s29_s1 + $0x8] sm:$0xff] %v4_v0 }

// kernel: tile.29
= control target key start
LH: loop header
LB: loop body
LE: loop exit
PB: predicated region body
PF: predicated region fallthrough
CT: control target
= control target key end

     0   :  { %s131_s10 = smov 120   ;;  %s132_s11 = smov 104   ;;  %vm3_vm0 = vcmask 64512   ;;  %vm9_vm1 = vcmask 1048512   ;;  %vm15_vm2 = vcmask 982912   ;;  %vm21_vm3 = vcmask 917312   ;;  %s207_s0 = inlined_call_operand.vmem [shape: f32[16,8], index: 0, kind: input, shape index: {}]   ;;  %s208_s1 = inlined_call_operand.vmem [shape: f32[1,128], index: 1, kind: output, shape index: {}]  }
   0x1   :  { %v101_v0 = vld [vmem:[%s207_s0 + $0xf] sm:$0x1]   ;;  %v103_v1 = vld [vmem:[%s207_s0 + $0xd] sm:$0x1]   ;;  %v105_v2 = vld [vmem:[%s207_s0 + $0xb] sm:$0x1]  }
   0x2   :  { %7 = vrot.lane.b32.xlu0 %v101_v0, %s131_s10  ;;  %19 = vrot.lane.b32.xlu1 %v103_v1, %s132_s11  ;;  %s133_s14 = smov 88   ;;  %v102_v3 = vld [vmem:[%s207_s0 + $0xe] sm:$0x1]   ;;  %v104_v4 = vld [vmem:[%s207_s0 + $0xc] sm:$0x1]   ;;  %s134_s19 = smov 112  }
   0x3   :  { %31 = vrot.lane.b32.xlu2 %v105_v2, %s133_s14  ;;  %s135_s20 = smov 96   ;;  %v106_v5 = vld [vmem:[%s207_s0 + $0xa] sm:$0x1]   ;;  %s136_s23 = smov 80   ;;  %v107_v6 = vld [vmem:[%s207_s0 + $0x9] sm:$0x1]  }
   0x4   :  { %v108_v7 = vld [vmem:[%s207_s0 + $0x8] sm:$0x1]   ;;  %s137_s28 = smov 72   ;;  %s138_s29 = smov 64   ;;  %v109_v8 = vld [vmem:[%s207_s0 + $0x7] sm:$0x1]  }
   0x5   :  { %s139_s3 = smov 56   ;;  %v110_v9 = vld [vmem:[%s207_s0 + $0x6] sm:$0x1]   ;;  %v111_v10 = vld [vmem:[%s207_s0 + $0x5] sm:$0x1]   ;;  %s140_s8 = smov 48  }
   0x6   :  { %s141_s9 = smov 40   ;;  %v112_v11 = vld [vmem:[%s207_s0 + $0x4] sm:$0x1]   ;;  %s142_s12 = smov 32   ;;  %v113_v12 = vld [vmem:[%s207_s0 + $0x3] sm:$0x1]  }
   0x7   :  { %v114_v13 = vld [vmem:[%s207_s0 + $0x2] sm:$0x1]   ;;  %s143_s17 = smov 24   ;;  %s144_s18 = smov 16   ;;  %v115_v14 = vld [vmem:[%s207_s0 + $0x1] sm:$0x1]  }
   0x8   :  { %s145_s21 = smov 8   ;;  %v2_v15 = vld [vmem:[%s207_s0] sm:$0x1]   ;;  %vm27_vm4 = vcmask 851712   ;;  %vm33_vm5 = vcmask 786112   ;;  %vm39_vm6 = vcmask 720512  }
   0x9   :  { %4 = vst.msk [vmem:[#allocation0] sm:$0x1] %vm3_vm0, %v2_v15   ;;  %vm45_vm7 = vcmask 654912   ;;  %vm51_vm8 = vcmask 589312   ;;  %vm57_vm9 = vcmask 523712   ;;  %vm63_vm10 = vcmask 458112  }
   0xa   :  { %13 = vrot.lane.b32.xlu0 %v102_v3, %s134_s19  ;;  %25 = vrot.lane.b32.xlu1 %v104_v4, %s135_s20  ;;  %vm69_vm11 = vcmask 392512   ;;  %vm75_vm12 = vcmask 326912   ;;  %vm81_vm13 = vcmask 261312   ;;  %vm87_vm14 = vcmask 195712  }
   0xb   :  { %37 = vrot.lane.b32.xlu2 %v106_v5, %s136_s23  ;;  %vm93_vm15 = vcmask 130112  }
  0x12   :  { %43 = vrot.lane.b32.xlu0 %v107_v6, %s137_s28  ;;  %49 = vrot.lane.b32.xlu1 %v108_v7, %s138_s29 }
  0x13   :  { %55 = vrot.lane.b32.xlu2 %v109_v8, %s139_s3 }
  0x1a   :  { %61 = vrot.lane.b32.xlu0 %v110_v9, %s140_s8  ;;  %67 = vrot.lane.b32.xlu1 %v111_v10, %s141_s9 }
  0x1b   :  { %73 = vrot.lane.b32.xlu2 %v112_v11, %s142_s12 }
  0x22   :  { %79 = vrot.lane.b32.xlu0 %v113_v12, %s143_s17  ;;  %85 = vrot.lane.b32.xlu1 %v114_v13, %s144_s18 }
  0x23   :  { %91 = vrot.lane.b32.xlu2 %v115_v14, %s145_s21 }
  0x5d   :  { %v32_v16 = vpop.permute.xlu2 %31  }
  0x65   :  { %v38_v17 = vpop.permute.xlu2 %37  }
  0x6d   :  { %v56_v18 = vpop.permute.xlu2 %55  }
  0x74   :  { %v8_v19 = vpop.permute.xlu0 %7   ;;  %v20_v20 = vpop.permute.xlu1 %19  }
  0x75   :  { %10 = vst.msk [vmem:[#allocation0] sm:$0x1] %vm9_vm1, %v8_v19   ;;  %v74_v21 = vpop.permute.xlu2 %73  }
  0x7c   :  { %v14_v22 = vpop.permute.xlu0 %13   ;;  %v26_v23 = vpop.permute.xlu1 %25  }
  0x7d   :  { %16 = vst.msk [vmem:[#allocation0] sm:$0x1] %vm15_vm2, %v14_v22   ;;  %v92_v24 = vpop.permute.xlu2 %91  }
  0x7e   :  { %22 = vst.msk [vmem:[#allocation0] sm:$0x1] %vm21_vm3, %v20_v20  }
  0x7f   :  { %28 = vst.msk [vmem:[#allocation0] sm:$0x1] %vm27_vm4, %v26_v23  }
  0x80   :  { %34 = vst.msk [vmem:[#allocation0] sm:$0x1] %vm33_vm5, %v32_v16  }
  0x81   :  { %40 = vst.msk [vmem:[#allocation0] sm:$0x1] %vm39_vm6, %v38_v17  }
  0x84   :  { %v44_v25 = vpop.permute.xlu0 %43   ;;  %v50_v26 = vpop.permute.xlu1 %49  }
  0x85   :  { %46 = vst.msk [vmem:[#allocation0] sm:$0x1] %vm45_vm7, %v44_v25  }
  0x86   :  { %52 = vst.msk [vmem:[#allocation0] sm:$0x1] %vm51_vm8, %v50_v26  }
  0x87   :  { %58 = vst.msk [vmem:[#allocation0] sm:$0x1] %vm57_vm9, %v56_v18  }
  0x8c   :  { %v62_v27 = vpop.permute.xlu0 %61   ;;  %v68_v28 = vpop.permute.xlu1 %67  }
  0x8d   :  { %64 = vst.msk [vmem:[#allocation0] sm:$0x1] %vm63_vm10, %v62_v27  }
  0x8e   :  { %70 = vst.msk [vmem:[#allocation0] sm:$0x1] %vm69_vm11, %v68_v28  }
  0x8f   :  { %76 = vst.msk [vmem:[#allocation0] sm:$0x1] %vm75_vm12, %v74_v21  }
  0x94   :  { %v80_v29 = vpop.permute.xlu0 %79   ;;  %v86_v30 = vpop.permute.xlu1 %85  }
  0x95   :  { %82 = vst.msk [vmem:[#allocation0] sm:$0x1] %vm81_vm13, %v80_v29  }
  0x96   :  { %88 = vst.msk [vmem:[#allocation0] sm:$0x1] %vm87_vm14, %v86_v30  }
  0x97   :  { %94 = vst.msk [vmem:[#allocation0] sm:$0x1] %vm93_vm15, %v92_v24  }
  0x9e   :  { %v97_v31 = vld [vmem:[#allocation0] sm:$0x1] }
  0x9f   :  { %100 = vst [vmem:[%s208_s1] sm:$0x1] %v97_v31 }

// kernel: encoder_block_forward.3
= control target key start
LH: loop header
LB: loop body
LE: loop exit
PB: predicated region body
PF: predicated region fallthrough
CT: control target
= control target key end

     0   :  { %s1133_s18 = smov 0   ;;  %s1135_s19 = smov 0   ;;  %s1256_s0 = inlined_call_operand.vmem [shape: bf16[2,16,128], index: 0, kind: input, shape index: {}, may-alias: {0,1,2}]   ;;  %s1257_s1 = inlined_call_operand.vmem [shape: bf16[2,16,128], index: 1, kind: input, shape index: {}, may-alias: {0,1,2}]   ;;  %s1258_s2 = inlined_call_operand.vmem [shape: bf16[2,16,128], index: 2, kind: input, shape index: {}, may-alias: {0,1,2}]   ;;  %s1259_s3 = inlined_call_operand.vmem [shape: bf16[3,128,128], index: 3, kind: input, shape index: {}]   ;;  %s1260_s4 = inlined_call_operand.vmem [shape: bf16[2,16,128], index: 4, kind: output, shape index: {0}]   ;;  %s1261_s5 = inlined_call_operand.vmem [shape: f32[2,1,2,128], index: 5, kind: output, shape index: {1}]  }
   0x1   :  { %s1137_s0 = smov 0  }
   0x2 LB: > { %s28_s2 = sadd.s32 1, %s1096_s19  ;;  %p875_p0 = scmp.ge.s32.totalorder %s1100_s0, 1  ;;  %s1100_s0 = sphi %s1137_s0, %s16_s0   ;;  %s1096_s19 = sphi %s1135_s19, %s1263_s19   ;;  %s1092_s18 = sphi %s1133_s18, %s1262_s18  }
   0x3   : > { %p30_p1 = scmp.ge.s32.totalorder %s28_s2, 2  ;;  %p271_p2 = scmp.lt.s32.totalorder %s1100_s0, 3 }
   0x5   : > { %s1265_s2 = smov (%p30_p1, %s28_s2), 0  ;;  %p272_p3 = pnand %p875_p0, %p271_p2 }
   0x6   : > { %p355_p4 = scmp.lt.s32.totalorder (!%p272_p3), %s1092_s18, 1 }
   0x7   : > { %275 = sbr.rel (%p272_p3) target bundleno = 210 (0xd2), region = 36 }
   0xc   : > { %v1039_v0 = vld [vmem:[%s1259_s3 + $0x78] sm:$0xff]  ;;  %v1038_v3 = vld [vmem:[%s1259_s3 + $0x70] sm:$0xff]  ;;  %s1267_s18 = smov (!%p355_p4, %s1092_s18), 1  ;;  %v1037_v6 = vld [vmem:[%s1259_s3 + $0x68] sm:$0xff]  ;;  %v1102_v23 = vmov 0.0   ;;  %vm420_vm0 = vcmask 1040384  }
   0xd   : > { %v1031_v1 = vld [vmem:[%s1259_s3 + $0x38] sm:$0xff]  ;;  %526 = vmatpush.bf16.msra.mxu0 %v1039_v0  ;;  %v1030_v4 = vld [vmem:[%s1259_s3 + $0x30] sm:$0xff]  ;;  %v1029_v7 = vld [vmem:[%s1259_s3 + $0x28] sm:$0xff]  ;;  %s1020_s13 = sshll.u32 %s1267_s18, 3  ;;  %v416_v24 = vrot.slane %v1102_v23, 7  ;;  %v435_v30 = vrot.slane %v1102_v23, 1 }
   0xe   : > { %v1047_v2 = vld [vmem:[%s1259_s3 + $0xb8] sm:$0xff]  ;;  %588 = vmatpush.bf16.msra.mxu1 %v1031_v1  ;;  %v1046_v5 = vld [vmem:[%s1259_s3 + $0xb0] sm:$0xff]  ;;  %v1045_v8 = vld [vmem:[%s1259_s3 + $0xa8] sm:$0xff]  ;;  %s1195_s24 = scalar_lea.vmem %s1257_s1, %s1020_s13  ;;  %vm428_vm1 = vcmask 1046528   ;;  %s388_s29 = scalar_lea.vmem %s1260_s4, %s1020_s13 }
   0xf   : > { %667 = vmatpush.bf16.msra.mxu2 %v1047_v2  ;;  %v1036_v9 = vld [vmem:[%s1259_s3 + $0x60] sm:$0xff]  ;;  %v1035_v12 = vld [vmem:[%s1259_s3 + $0x58] sm:$0xff]  ;;  %v1034_v16 = vld [vmem:[%s1259_s3 + $0x50] sm:$0xff]  ;;  %s884_s13 = sshll.u32 %s1267_s18, 1 }
  0x10   : > { %v1028_v10 = vld [vmem:[%s1259_s3 + $0x20] sm:$0xff]  ;;  %v1027_v13 = vld [vmem:[%s1259_s3 + $0x18] sm:$0xff]  ;;  %v1026_v17 = vld [vmem:[%s1259_s3 + $0x10] sm:$0xff]  ;;  %s396_s7 = scalar_lea.vmem %s1261_s5, %s884_s13 }
  0x11   : > { %527 = vmatpush.bf16.msra.mxu0 %v1038_v3  ;;  %v1044_v11 = vld [vmem:[%s1259_s3 + $0xa0] sm:$0xff]  ;;  %v1043_v14 = vld [vmem:[%s1259_s3 + $0x98] sm:$0xff]  ;;  %v1042_v20 = vld [vmem:[%s1259_s3 + $0x90] sm:$0xff] }
  0x12   : > { %589 = vmatpush.bf16.msra.mxu1 %v1030_v4  ;;  %v397_v15 = vld [vmem:[%s1195_s24] sm:$0xff]   ;;  %v1033_v21 = vld [vmem:[%s1259_s3 + $0x48] sm:$0xff] }
  0x13   : > { %668 = vmatpush.bf16.msra.mxu2 %v1046_v5  ;;  %v399_v18 = vunpack.c.l.bf16 %v397_v15  ;;  %v400_v19 = vunpack.c.h.bf16 %v397_v15  ;;  %v1025_v22 = vld [vmem:[%s1259_s3 + $0x8] sm:$0xff]  ;;  %v1032_v31 = vld [vmem:[%s1259_s3 + $0x40] sm:$0xff] }
  0x14   : > { %v1041_v27 = vld [vmem:[%s1259_s3 + $0x88] sm:$0xff]  ;;  %v1024_v32 = vld [vmem:[%s1259_s3] sm:$0xff] }
  0x15   : > { %528 = vmatpush.bf16.msra.mxu0 %v1037_v6  ;;  %v421_v25 = vrot.slane %v399_v18, 7  ;;  %v422_v26 = vrot.slane %v400_v19, 7  ;;  %v429_v28 = vrot.slane %v399_v18, 1  ;;  %v430_v29 = vrot.slane %v400_v19, 1  ;;  %v1040_v35 = vld [vmem:[%s1259_s3 + $0x80] sm:$0xff] }
  0x16   : > { %590 = vmatpush.bf16.msra.mxu1 %v1029_v7  ;;  %v1023_v38 = vld [vmem:[%s1195_s24] sm:$0xff] }
  0x17   : > { %669 = vmatpush.bf16.msra.mxu2 %v1045_v8  ;;  %v423_v33 = vsel %vm420_vm0, %v421_v25, %v422_v26  ;;  %v426_v34 = vsel %vm420_vm0, %v416_v24, %v421_v25  ;;  %v431_v36 = vsel %vm428_vm1, %v429_v28, %v430_v29  ;;  %v437_v37 = vsel %vm428_vm1, %v430_v29, %v435_v30 }
  0x18   : > { %v427_v39 = vpack.c.bf16 %v423_v33, %v426_v34  ;;  %v438_v40 = vpack.c.bf16 %v437_v37, %v431_v36 }
  0x19   : > { %529 = vmatpush.bf16.msra.mxu0 %v1036_v9 }
  0x1a   : > { %591 = vmatpush.bf16.msra.mxu1 %v1028_v10 }
  0x1b   : > { %670 = vmatpush.bf16.msra.mxu2 %v1044_v11 }
  0x1d   : > { %530 = vmatpush.bf16.msra.mxu0 %v1035_v12 }
  0x1e   : > { %592 = vmatpush.bf16.msra.mxu1 %v1027_v13 }
  0x1f   : > { %671 = vmatpush.bf16.msra.mxu2 %v1043_v14 }
  0x21   : > { %531 = vmatpush.bf16.msra.mxu0 %v1034_v16 }
  0x22   : > { %593 = vmatpush.bf16.msra.mxu1 %v1026_v17 }
  0x23   : > { %672 = vmatpush.bf16.msra.mxu2 %v1042_v20 }
  0x25   : > { %532 = vmatpush.bf16.msra.mxu0 %v1033_v21 }
  0x26   : > { %594 = vmatpush.bf16.msra.mxu1 %v1025_v22 }
  0x27   : > { %673 = vmatpush.bf16.msra.mxu2 %v1041_v27 }
  0x29   : > { %533 = vmatpush.bf16.msra.mxu0 %v1032_v31 }
  0x2a   : > { %595 = vmatpush.bf16.msra.mxu1 %v1024_v32 }
  0x2b   : > { %674 = vmatpush.bf16.msra.mxu2 %v1040_v35 }
  0x2c   : > { %534 = vmatmul.bf16.vlgmr.msra.gmra.mxu0 %v1023_v38 }
  0x2d   : > { %596 = vmatmul.bf16.vlgmr.msra.gmra.mxu1 %v427_v39 }
  0x2e   : > { %675 = vmatmul.bf16.vlgmr.msra.gmra.mxu2 %v438_v40 }
  0xa9   : > { %v535_v41 = vpop.f32.mrf.mxu0 }
  0xaa   : > { %v597_v42 = vpop.f32.mrf.mxu1 }
  0xab   : > { %v598_v43 = vadd.f32 %v597_v42, %v535_v41 }
  0xb1   : > { %v676_v44 = vpop.f32.mrf.mxu2  ;;  %v537_v46 = vpop.f32.mrf.mxu0 }
  0xb2   : > { %v681_v45 = vadd.f32 %v676_v44, %v598_v43  ;;  %v599_v47 = vpop.f32.mrf.mxu1 }
  0xb3   : > { %v600_v49 = vadd.f32 %v599_v47, %v537_v46 }
  0xb4   : > { %v683_v48 = vpack.c.bf16 %v681_v45, %v681_v45 }
  0xb6   : > { %v687_v52 = vunpack.c.l.bf16 %v683_v48 }
  0xb8   : > { %v696_v56 = vmul.f32 %v687_v52, %v687_v52 }
  0xb9   : > { %v678_v50 = vpop.f32.mrf.mxu2 }
  0xba   : > { %v682_v51 = vadd.f32 %v678_v50, %v600_v49 }
  0xbc   : > { %v684_v53 = vpack.c.bf16 %v682_v51, %v682_v51  ;;  %v1051_v54 = vpack.c.bf16 %v682_v51, %v681_v45 }
  0xbe   : > { %1052 = vst [vmem:[%s388_s29] sm:$0xff] %v1051_v54   ;;  %v688_v55 = vunpack.c.l.bf16 %v684_v53 }
  0xc0   : > { %v689_v57 = vadd.f32 %v688_v55, %v687_v52  ;;  %v697_v58 = vmul.f32 %v688_v55, %v688_v55 }
  0xc2   : > { %v690_v59 = vrot.slane %v689_v57, 4  ;;  %v698_v60 = vadd.f32 %v697_v58, %v696_v56 }
  0xc4   : > { %v691_v61 = vadd.f32 %v690_v59, %v689_v57  ;;  %v699_v62 = vrot.slane %v698_v60, 4 }
  0xc6   : > { %v692_v63 = vrot.slane %v691_v61, 2  ;;  %v700_v0 = vadd.f32 %v699_v62, %v698_v60 }
  0xc8   : > { %v693_v1 = vadd.f32 %v692_v63, %v691_v61  ;;  %v701_v2 = vrot.slane %v700_v0, 2 }
  0xca   : > { %v694_v3 = vrot.slane %v693_v1, 1  ;;  %v702_v4 = vadd.f32 %v701_v2, %v700_v0 }
  0xcc   : > { %v703_v5 = vrot.slane %v702_v4, 1  ;;  %v695_v6 = vadd.f32 %v694_v3, %v693_v1 }
  0xce   : > { %v704_v7 = vadd.f32 %v703_v5, %v702_v4 }
  0xd0   : > { %v705_v8 = vsel %vm420_vm0, %v695_v6, %v704_v7 }
  0xd1   : > { %706 = vst [vmem:[%s396_s7] sm:$0x3] %v705_v8 }
  0xd2 PF: > { %s16_s0 = sadd.s32 1, %s1100_s0   ;;  %s1262_s18 = smov %s1096_s19 }
  0xd3   : > { %p13_p5 = scmp.ge.s32.totalorder %s16_s0, 4   ;;  %s1263_s19 = smov %s1265_s2 }
  0xd5   :  { %15 = sbr.rel (!%p13_p5) target bundleno = 2 (0x2), region = 86 }

// kernel: encoder_block_forward.4
= control target key start
LH: loop header
LB: loop body
LE: loop exit
PB: predicated region body
PF: predicated region fallthrough
CT: control target
= control target key end

     0   :  { %s1213_s23 = smov 0   ;;  %s1215_s24 = smov 0   ;;  %s1338_s0 = inlined_call_operand.vmem [shape: bf16[2,16,128], index: 0, kind: input, shape index: {}, may-alias: {0,1,2}]   ;;  %s1339_s1 = inlined_call_operand.vmem [shape: bf16[2,16,128], index: 1, kind: input, shape index: {}, may-alias: {0,1,2}]   ;;  %s1340_s2 = inlined_call_operand.vmem [shape: bf16[2,16,128], index: 2, kind: input, shape index: {}, may-alias: {0,1,2}]   ;;  %s1341_s3 = inlined_call_operand.vmem [shape: f32[1,128], index: 3, kind: input, shape index: {}]   ;;  %s1342_s4 = inlined_call_operand.vmem [shape: f32[1,128], index: 4, kind: input, shape index: {}]   ;;  %s1343_s5 = inlined_call_operand.vmem [shape: bf16[3,128,128], index: 5, kind: input, shape index: {}]   ;;  %s1344_s6 = inlined_call_operand.vmem [shape: bf16[2,16,128], index: 6, kind: output, shape index: {0}]   ;;  %s1345_s7 = inlined_call_operand.vmem [shape: f32[2,1,2,128], index: 7, kind: output, shape index: {1}]  }
   0x1   :  { %s1217_s2 = smov 0  }
   0x2 LB: > { %s30_s25 = sadd.s32 1, %s1166_s24  ;;  %p944_p0 = scmp.ge.s32.totalorder %s1170_s2, 1  ;;  %s1170_s2 = sphi %s1217_s2, %s18_s2   ;;  %s1166_s24 = sphi %s1215_s24, %s1347_s24   ;;  %s1162_s23 = sphi %s1213_s23, %s1346_s23  }
   0x3   : > { %p32_p1 = scmp.ge.s32.totalorder %s30_s25, 2  ;;  %p321_p2 = scmp.lt.s32.totalorder %s1170_s2, 3 }
   0x5   : > { %s1349_s25 = smov (%p32_p1, %s30_s25), 0  ;;  %p322_p3 = pnand %p944_p0, %p321_p2 }
   0x6   : > { %p409_p4 = scmp.lt.s32.totalorder (!%p322_p3), %s1162_s23, 1 }
   0x7   : > { %325 = sbr.rel (%p322_p3) target bundleno = 210 (0xd2), region = 44 }
   0xc   : > { %v1103_v0 = vld [vmem:[%s1343_s5 + $0x78] sm:$0xff]  ;;  %v1102_v3 = vld [vmem:[%s1343_s5 + $0x70] sm:$0xff]  ;;  %s1351_s23 = smov (!%p409_p4, %s1162_s23), 1  ;;  %v1101_v6 = vld [vmem:[%s1343_s5 + $0x68] sm:$0xff]  ;;  %v1172_v31 = vmov 0.0   ;;  %vm494_vm0 = vcmask 1040384  }
   0xd   : > { %v1095_v1 = vld [vmem:[%s1343_s5 + $0x38] sm:$0xff]  ;;  %595 = vmatpush.bf16.msra.mxu0 %v1103_v0  ;;  %v1094_v4 = vld [vmem:[%s1343_s5 + $0x30] sm:$0xff]  ;;  %s1085_s15 = sshll.u32 %s1351_s23, 3  ;;  %v1093_v7 = vld [vmem:[%s1343_s5 + $0x28] sm:$0xff]  ;;  %v490_v32 = vrot.slane %v1172_v31, 7  ;;  %v510_v38 = vrot.slane %v1172_v31, 1 }
   0xe   : > { %v1111_v2 = vld [vmem:[%s1343_s5 + $0xb8] sm:$0xff]  ;;  %657 = vmatpush.bf16.msra.mxu1 %v1095_v1  ;;  %v1110_v5 = vld [vmem:[%s1343_s5 + $0xb0] sm:$0xff]  ;;  %s416_s18 = scalar_lea.vmem %s1339_s1, %s1085_s15  ;;  %v1109_v8 = vld [vmem:[%s1343_s5 + $0xa8] sm:$0xff]  ;;  %vm503_vm1 = vcmask 1046528   ;;  %s442_s21 = scalar_lea.vmem %s1344_s6, %s1085_s15 }
   0xf   : > { %736 = vmatpush.bf16.msra.mxu2 %v1111_v2  ;;  %v1113_v9 = vld [vmem:[%s416_s18] sm:$0xff]   ;;  %v1099_v19 = vld [vmem:[%s1343_s5 + $0x58] sm:$0xff]  ;;  %v1098_v24 = vld [vmem:[%s1343_s5 + $0x50] sm:$0xff]  ;;  %s953_s15 = sshll.u32 %s1351_s23, 1 }
  0x10   : > { %v1114_v10 = vunpack.c.l.bf16 %v1113_v9  ;;  %v1115_v11 = vunpack.c.h.bf16 %v1113_v9  ;;  %v1146_v12 = vld [vmem:[%s1341_s3] ss:$0 sm:$0xff]  ;;  %v1091_v20 = vld [vmem:[%s1343_s5 + $0x18] sm:$0xff]  ;;  %v1090_v25 = vld [vmem:[%s1343_s5 + $0x10] sm:$0xff]  ;;  %s450_s26 = scalar_lea.vmem %s1345_s7, %s953_s15 }
  0x11   : > { %596 = vmatpush.bf16.msra.mxu0 %v1102_v3  ;;  %v1100_v13 = vld [vmem:[%s1343_s5 + $0x60] sm:$0xff]  ;;  %v1107_v23 = vld [vmem:[%s1343_s5 + $0x98] sm:$0xff]  ;;  %v1106_v28 = vld [vmem:[%s1343_s5 + $0x90] sm:$0xff] }
  0x12   : > { %658 = vmatpush.bf16.msra.mxu1 %v1094_v4  ;;  %v1092_v14 = vld [vmem:[%s1343_s5 + $0x20] sm:$0xff]  ;;  %v460_v17 = vmul.f32 %v1146_v12, %v1114_v10  ;;  %v461_v18 = vmul.f32 %v1146_v12, %v1115_v11  ;;  %v1097_v29 = vld [vmem:[%s1343_s5 + $0x48] sm:$0xff] }
  0x13   : > { %737 = vmatpush.bf16.msra.mxu2 %v1110_v5  ;;  %v1147_v15 = vld [vmem:[%s1342_s4] ss:$0 sm:$0xff]  ;;  %v1089_v30 = vld [vmem:[%s1343_s5 + $0x8] sm:$0xff] }
  0x14   : > { %v1108_v16 = vld [vmem:[%s1343_s5 + $0xa0] sm:$0xff]  ;;  %v465_v21 = vadd.f32 %v1147_v15, %v460_v17  ;;  %v466_v22 = vadd.f32 %v1147_v15, %v461_v18  ;;  %v1105_v35 = vld [vmem:[%s1343_s5 + $0x88] sm:$0xff] }
  0x15   : > { %597 = vmatpush.bf16.msra.mxu0 %v1101_v6  ;;  %v1096_v39 = vld [vmem:[%s1343_s5 + $0x40] sm:$0xff] }
  0x16   : > { %659 = vmatpush.bf16.msra.mxu1 %v1093_v7  ;;  %v467_v26 = vmax.f32 %v465_v21, 0.0  ;;  %v468_v27 = vmax.f32 %v466_v22, 0.0  ;;  %v1088_v40 = vld [vmem:[%s1343_s5] sm:$0xff] }
  0x17   : > { %738 = vmatpush.bf16.msra.mxu2 %v1109_v8  ;;  %v1104_v43 = vld [vmem:[%s1343_s5 + $0x80] sm:$0xff] }
  0x18   : > { %v495_v33 = vrot.slane %v467_v26, 7  ;;  %v496_v34 = vrot.slane %v468_v27, 7  ;;  %v504_v36 = vrot.slane %v467_v26, 1  ;;  %v505_v37 = vrot.slane %v468_v27, 1 }
  0x19   : > { %598 = vmatpush.bf16.msra.mxu0 %v1100_v13  ;;  %v502_v46 = vpack.c.bf16 %v468_v27, %v467_v26 }
  0x1a   : > { %660 = vmatpush.bf16.msra.mxu1 %v1092_v14  ;;  %v497_v41 = vsel %vm494_vm0, %v495_v33, %v496_v34  ;;  %v500_v42 = vsel %vm494_vm0, %v490_v32, %v495_v33  ;;  %v506_v44 = vsel %vm503_vm1, %v504_v36, %v505_v37  ;;  %v512_v45 = vsel %vm503_vm1, %v505_v37, %v510_v38 }
  0x1b   : > { %739 = vmatpush.bf16.msra.mxu2 %v1108_v16  ;;  %v501_v47 = vpack.c.bf16 %v497_v41, %v500_v42  ;;  %v513_v48 = vpack.c.bf16 %v512_v45, %v506_v44 }
  0x1d   : > { %599 = vmatpush.bf16.msra.mxu0 %v1099_v19 }
  0x1e   : > { %661 = vmatpush.bf16.msra.mxu1 %v1091_v20 }
  0x1f   : > { %740 = vmatpush.bf16.msra.mxu2 %v1107_v23 }
  0x21   : > { %600 = vmatpush.bf16.msra.mxu0 %v1098_v24 }
  0x22   : > { %662 = vmatpush.bf16.msra.mxu1 %v1090_v25 }
  0x23   : > { %741 = vmatpush.bf16.msra.mxu2 %v1106_v28 }
  0x25   : > { %601 = vmatpush.bf16.msra.mxu0 %v1097_v29 }
  0x26   : > { %663 = vmatpush.bf16.msra.mxu1 %v1089_v30 }
  0x27   : > { %742 = vmatpush.bf16.msra.mxu2 %v1105_v35 }
  0x29   : > { %602 = vmatpush.bf16.msra.mxu0 %v1096_v39 }
  0x2a   : > { %664 = vmatpush.bf16.msra.mxu1 %v1088_v40 }
  0x2b   : > { %743 = vmatpush.bf16.msra.mxu2 %v1104_v43 }
  0x2c   : > { %603 = vmatmul.bf16.vlgmr.msra.gmra.mxu0 %v502_v46 }
  0x2d   : > { %665 = vmatmul.bf16.vlgmr.msra.gmra.mxu1 %v501_v47 }
  0x2e   : > { %744 = vmatmul.bf16.vlgmr.msra.gmra.mxu2 %v513_v48 }
  0xa9   : > { %v604_v49 = vpop.f32.mrf.mxu0 }
  0xaa   : > { %v666_v50 = vpop.f32.mrf.mxu1 }
  0xab   : > { %v667_v51 = vadd.f32 %v666_v50, %v604_v49 }
  0xb1   : > { %v745_v52 = vpop.f32.mrf.mxu2  ;;  %v606_v54 = vpop.f32.mrf.mxu0 }
  0xb2   : > { %v750_v53 = vadd.f32 %v745_v52, %v667_v51  ;;  %v668_v55 = vpop.f32.mrf.mxu1 }
  0xb3   : > { %v669_v57 = vadd.f32 %v668_v55, %v606_v54 }
  0xb4   : > { %v752_v56 = vpack.c.bf16 %v750_v53, %v750_v53 }
  0xb6   : > { %v756_v60 = vunpack.c.l.bf16 %v752_v56 }
  0xb8   : > { %v765_v0 = vmul.f32 %v756_v60, %v756_v60 }
  0xb9   : > { %v747_v58 = vpop.f32.mrf.mxu2 }
  0xba   : > { %v751_v59 = vadd.f32 %v747_v58, %v669_v57 }
  0xbc   : > { %v753_v61 = vpack.c.bf16 %v751_v59, %v751_v59  ;;  %v1119_v62 = vpack.c.bf16 %v751_v59, %v750_v53 }
  0xbe   : > { %1120 = vst [vmem:[%s442_s21] sm:$0xff] %v1119_v62   ;;  %v757_v63 = vunpack.c.l.bf16 %v753_v61 }
  0xc0   : > { %v758_v1 = vadd.f32 %v757_v63, %v756_v60  ;;  %v766_v2 = vmul.f32 %v757_v63, %v757_v63 }
  0xc2   : > { %v759_v3 = vrot.slane %v758_v1, 4  ;;  %v767_v4 = vadd.f32 %v766_v2, %v765_v0 }
  0xc4   : > { %v760_v5 = vadd.f32 %v759_v3, %v758_v1  ;;  %v768_v6 = vrot.slane %v767_v4, 4 }
  0xc6   : > { %v761_v7 = vrot.slane %v760_v5, 2  ;;  %v769_v8 = vadd.f32 %v768_v6, %v767_v4 }
  0xc8   : > { %v762_v9 = vadd.f32 %v761_v7, %v760_v5  ;;  %v770_v10 = vrot.slane %v769_v8, 2 }
  0xca   : > { %v763_v11 = vrot.slane %v762_v9, 1  ;;  %v771_v12 = vadd.f32 %v770_v10, %v769_v8 }
  0xcc   : > { %v772_v13 = vrot.slane %v771_v12, 1  ;;  %v764_v14 = vadd.f32 %v763_v11, %v762_v9 }
  0xce   : > { %v773_v15 = vadd.f32 %v772_v13, %v771_v12 }
  0xd0   : > { %v774_v16 = vsel %vm494_vm0, %v764_v14, %v773_v15 }
  0xd1   : > { %775 = vst [vmem:[%s450_s26] sm:$0x3] %v774_v16 }
  0xd2 PF: > { %s18_s2 = sadd.s32 1, %s1170_s2   ;;  %s1346_s23 = smov %s1166_s24 }
  0xd3   : > { %p15_p5 = scmp.ge.s32.totalorder %s18_s2, 4   ;;  %s1347_s24 = smov %s1349_s25 }
  0xd5   :  { %17 = sbr.rel (!%p15_p5) target bundleno = 2 (0x2), region = 94 }

// kernel: encoder_block_forward.5
= control target key start
LH: loop header
LB: loop body
LE: loop exit
PB: predicated region body
PF: predicated region fallthrough
CT: control target
= control target key end

     0   :  { %s811_s18 = smov 0   ;;  %s813_s19 = smov 0   ;;  %s1066_s0 = inlined_call_operand.vmem [shape: bf16[2,16,128], index: 0, kind: input, shape index: {}]   ;;  %s1067_s1 = inlined_call_operand.vmem [shape: f32[1,128], index: 1, kind: input, shape index: {}]   ;;  %s1068_s2 = inlined_call_operand.vmem [shape: f32[1,128], index: 2, kind: input, shape index: {}]   ;;  %s1069_s3 = inlined_call_operand.vmem [shape: f32[4,128,128], index: 3, kind: input, shape index: {}]   ;;  %s1070_s4 = inlined_call_operand.vmem [shape: f32[2,16,128], index: 4, kind: output, shape index: {0}]   ;;  %s1071_s5 = inlined_call_operand.vmem [shape: f32[2,4,128], index: 5, kind: output, shape index: {1}]  }
   0x1   :  { %s815_s20 = smov 0  }
   0x2 LB: > { %s28_s21 = sadd.s32 1, %s775_s19  ;;  %p669_p0 = scmp.ge.s32.totalorder %s779_s20, 1  ;;  %s779_s20 = sphi %s815_s20, %s16_s20   ;;  %s775_s19 = sphi %s813_s19, %s1073_s19   ;;  %s771_s18 = sphi %s811_s18, %s1072_s18  }
   0x3   : > { %p30_p1 = scmp.ge.s32.totalorder %s28_s21, 2  ;;  %p213_p2 = scmp.lt.s32.totalorder %s779_s20, 3 }
   0x5   : > { %s1075_s21 = smov (%p30_p1, %s28_s21), 0  ;;  %p214_p3 = pnand %p669_p0, %p213_p2 }
   0x6   : > { %p257_p4 = scmp.lt.s32.totalorder (!%p214_p3), %s771_s18, 1 }
   0x7   : > { %217 = sbr.rel (%p214_p3) target bundleno = 191 (0xbf), region = 36 }
   0xc   : > { %v706_v0 = vld [vmem:[%s1069_s3 + $0x178] sm:$0xff]  ;;  %v705_v2 = vld [vmem:[%s1069_s3 + $0x170] sm:$0xff]  ;;  %v704_v4 = vld [vmem:[%s1069_s3 + $0x168] sm:$0xff]  ;;  %s1077_s18 = smov (!%p257_p4, %s771_s18), 1  ;;  %vm338_vm0 = vcmask 1043458   ;;  %vm309_vm1 = vcmask 1041408  }
   0xd   : > { %v722_v1 = vld [vmem:[%s1069_s3 + $0x1f8] sm:$0xff]  ;;  %477 = vmatpush.msra.mxu2 %v706_v0  ;;  %v721_v3 = vld [vmem:[%s1069_s3 + $0x1f0] sm:$0xff]  ;;  %v720_v5 = vld [vmem:[%s1069_s3 + $0x1e8] sm:$0xff]  ;;  %s725_s23 = sshll.u32 %s1077_s18, 3  ;;  %s726_s26 = sshll.u32 %s1077_s18, 4  ;;  %vm387_vm2 = vcmask 1041409  }
   0xe   : > { %514 = vmatpush.msra.mxu3 %v722_v1  ;;  %v382_v6 = vld [vmem:[%s1069_s3 + $0x78] sm:$0xff]  ;;  %v381_v8 = vld [vmem:[%s1069_s3 + $0x70] sm:$0xff]  ;;  %v703_v10 = vld [vmem:[%s1069_s3 + $0x160] sm:$0xff]  ;;  %s264_s15 = scalar_lea.vmem %s1066_s0, %s725_s23  ;;  %vm389_vm3 = vcmask 1042434   ;;  %vm391_vm4 = vcmask 1043459   ;;  %s674_s11 = sshll.u32 %s1077_s18, 2 }
   0xf   : > { %v690_v7 = vld [vmem:[%s1069_s3 + $0xf8] sm:$0xff]  ;;  %478 = vmatpush.msra.mxu2 %v705_v2  ;;  %v689_v9 = vld [vmem:[%s1069_s3 + $0xf0] sm:$0xff]  ;;  %394 = vmatpush.msra.mxu0 %v382_v6  ;;  %v719_v11 = vld [vmem:[%s1069_s3 + $0x1e0] sm:$0xff]  ;;  %s282_s14 = scalar_lea.vmem %s1071_s5, %s674_s11 }
  0x10   : > { %515 = vmatpush.msra.mxu3 %v721_v3  ;;  %431 = vmatpush.msra.mxu1 %v690_v7  ;;  %v380_v12 = vld [vmem:[%s1069_s3 + $0x68] sm:$0xff]  ;;  %v702_v14 = vld [vmem:[%s1069_s3 + $0x158] sm:$0xff]  ;;  %v379_v16 = vld [vmem:[%s1069_s3 + $0x60] sm:$0xff] }
  0x11   : > { %479 = vmatpush.msra.mxu2 %v704_v4  ;;  %v688_v13 = vld [vmem:[%s1069_s3 + $0xe8] sm:$0xff]  ;;  %395 = vmatpush.msra.mxu0 %v381_v8  ;;  %v718_v15 = vld [vmem:[%s1069_s3 + $0x1d8] sm:$0xff]  ;;  %v687_v17 = vld [vmem:[%s1069_s3 + $0xe0] sm:$0xff] }
  0x12   : > { %516 = vmatpush.msra.mxu3 %v720_v5  ;;  %432 = vmatpush.msra.mxu1 %v689_v9  ;;  %v701_v18 = vld [vmem:[%s1069_s3 + $0x150] sm:$0xff]  ;;  %v378_v20 = vld [vmem:[%s1069_s3 + $0x58] sm:$0xff]  ;;  %v700_v22 = vld [vmem:[%s1069_s3 + $0x148] sm:$0xff] }
  0x13   : > { %480 = vmatpush.msra.mxu2 %v703_v10  ;;  %396 = vmatpush.msra.mxu0 %v380_v12  ;;  %v717_v19 = vld [vmem:[%s1069_s3 + $0x1d0] sm:$0xff]  ;;  %v686_v21 = vld [vmem:[%s1069_s3 + $0xd8] sm:$0xff]  ;;  %v716_v23 = vld [vmem:[%s1069_s3 + $0x1c8] sm:$0xff] }
  0x14   : > { %517 = vmatpush.msra.mxu3 %v719_v11  ;;  %433 = vmatpush.msra.mxu1 %v688_v13  ;;  %v377_v24 = vld [vmem:[%s1069_s3 + $0x50] sm:$0xff]  ;;  %v699_v26 = vld [vmem:[%s1069_s3 + $0x140] sm:$0xff]  ;;  %v376_v28 = vld [vmem:[%s1069_s3 + $0x48] sm:$0xff] }
  0x15   : > { %481 = vmatpush.msra.mxu2 %v702_v14  ;;  %397 = vmatpush.msra.mxu0 %v379_v16  ;;  %v685_v25 = vld [vmem:[%s1069_s3 + $0xd0] sm:$0xff]  ;;  %v715_v27 = vld [vmem:[%s1069_s3 + $0x1c0] sm:$0xff]  ;;  %v684_v29 = vld [vmem:[%s1069_s3 + $0xc8] sm:$0xff] }
  0x16   : > { %518 = vmatpush.msra.mxu3 %v718_v15  ;;  %434 = vmatpush.msra.mxu1 %v687_v17  ;;  %v698_v30 = vld [vmem:[%s1069_s3 + $0x138] sm:$0xff]  ;;  %v375_v32 = vld [vmem:[%s1069_s3 + $0x40] sm:$0xff]  ;;  %v697_v34 = vld [vmem:[%s1069_s3 + $0x130] sm:$0xff] }
  0x17   : > { %482 = vmatpush.msra.mxu2 %v701_v18  ;;  %398 = vmatpush.msra.mxu0 %v378_v20  ;;  %v714_v31 = vld [vmem:[%s1069_s3 + $0x1b8] sm:$0xff]  ;;  %v683_v33 = vld [vmem:[%s1069_s3 + $0xc0] sm:$0xff]  ;;  %v713_v35 = vld [vmem:[%s1069_s3 + $0x1b0] sm:$0xff] }
  0x18   : > { %519 = vmatpush.msra.mxu3 %v717_v19  ;;  %435 = vmatpush.msra.mxu1 %v686_v21  ;;  %v696_v36 = vld [vmem:[%s1069_s3 + $0x128] sm:$0xff]  ;;  %v374_v37 = vld [vmem:[%s1069_s3 + $0x38] sm:$0xff]  ;;  %v695_v40 = vld [vmem:[%s1069_s3 + $0x120] sm:$0xff] }
  0x19   : > { %483 = vmatpush.msra.mxu2 %v700_v22  ;;  %399 = vmatpush.msra.mxu0 %v377_v24  ;;  %v682_v38 = vld [vmem:[%s1069_s3 + $0xb8] sm:$0xff]  ;;  %v712_v39 = vld [vmem:[%s1069_s3 + $0x1a8] sm:$0xff]  ;;  %v373_v41 = vld [vmem:[%s1069_s3 + $0x30] sm:$0xff] }
  0x1a   : > { %520 = vmatpush.msra.mxu3 %v716_v23  ;;  %436 = vmatpush.msra.mxu1 %v685_v25  ;;  %v681_v42 = vld [vmem:[%s1069_s3 + $0xb0] sm:$0xff]  ;;  %v711_v43 = vld [vmem:[%s1069_s3 + $0x1a0] sm:$0xff]  ;;  %v372_v46 = vld [vmem:[%s1069_s3 + $0x28] sm:$0xff] }
  0x1b   : > { %484 = vmatpush.msra.mxu2 %v699_v26  ;;  %400 = vmatpush.msra.mxu0 %v376_v28  ;;  %v728_v44 = vld [vmem:[%s264_s15] sm:$0xff]   ;;  %v680_v47 = vld [vmem:[%s1069_s3 + $0xa8] sm:$0xff]  ;;  %v694_v51 = vld [vmem:[%s1069_s3 + $0x118] sm:$0xff]  ;;  %s274_s15 = scalar_lea.vmem %s1070_s4, %s726_s26 }
  0x1c   : > { %521 = vmatpush.msra.mxu3 %v715_v27  ;;  %437 = vmatpush.msra.mxu1 %v684_v29  ;;  %v755_v45 = vld [vmem:[%s1067_s1] ss:$0 sm:$0xff]  ;;  %v729_v48 = vunpack.c.l.bf16 %v728_v44  ;;  %v730_v49 = vunpack.c.h.bf16 %v728_v44  ;;  %v710_v52 = vld [vmem:[%s1069_s3 + $0x198] sm:$0xff]  ;;  %v693_v57 = vld [vmem:[%s1069_s3 + $0x110] sm:$0xff] }
  0x1d   : > { %485 = vmatpush.msra.mxu2 %v698_v30  ;;  %401 = vmatpush.msra.mxu0 %v375_v32  ;;  %v756_v50 = vld [vmem:[%s1068_s2] ss:$0 sm:$0xff]  ;;  %v709_v58 = vld [vmem:[%s1069_s3 + $0x190] sm:$0xff]  ;;  %v370_v59 = vld [vmem:[%s1069_s3 + $0x18] sm:$0xff] }
  0x1e   : > { %522 = vmatpush.msra.mxu3 %v714_v31  ;;  %438 = vmatpush.msra.mxu1 %v683_v33  ;;  %v371_v53 = vld [vmem:[%s1069_s3 + $0x20] sm:$0xff]  ;;  %v292_v55 = vmul.f32 %v755_v45, %v729_v48  ;;  %v293_v56 = vmul.f32 %v755_v45, %v730_v49  ;;  %v678_v60 = vld [vmem:[%s1069_s3 + $0x98] sm:$0xff]  ;;  %v692_v63 = vld [vmem:[%s1069_s3 + $0x108] sm:$0xff] }
  0x1f   : > { %486 = vmatpush.msra.mxu2 %v697_v34  ;;  %402 = vmatpush.msra.mxu0 %v374_v37  ;;  %v679_v54 = vld [vmem:[%s1069_s3 + $0xa0] sm:$0xff]  ;;  %v708_v0 = vld [vmem:[%s1069_s3 + $0x188] sm:$0xff]  ;;  %v369_v3 = vld [vmem:[%s1069_s3 + $0x10] sm:$0xff] }
  0x20   : > { %523 = vmatpush.msra.mxu3 %v713_v35  ;;  %439 = vmatpush.msra.mxu1 %v682_v38  ;;  %v297_v61 = vadd.f32 %v756_v50, %v292_v55  ;;  %v298_v62 = vadd.f32 %v756_v50, %v293_v56  ;;  %v677_v4 = vld [vmem:[%s1069_s3 + $0x90] sm:$0xff]  ;;  %v691_v5 = vld [vmem:[%s1069_s3 + $0x100] sm:$0xff]  ;;  %v368_v11 = vld [vmem:[%s1069_s3 + $0x8] sm:$0xff] }
  0x21   : > { %487 = vmatpush.msra.mxu2 %v696_v36  ;;  %403 = vmatpush.msra.mxu0 %v373_v41  ;;  %v707_v6 = vld [vmem:[%s1069_s3 + $0x180] sm:$0xff]  ;;  %v676_v12 = vld [vmem:[%s1069_s3 + $0x88] sm:$0xff] }
  0x22   : > { %524 = vmatpush.msra.mxu3 %v712_v39  ;;  %440 = vmatpush.msra.mxu1 %v681_v42  ;;  %v299_v1 = vmax.f32 %v297_v61, 0.0  ;;  %v300_v2 = vmax.f32 %v298_v62, 0.0  ;;  %v367_v19 = vld [vmem:[%s1069_s3] sm:$0xff] }
  0x23   : > { %488 = vmatpush.msra.mxu2 %v695_v40  ;;  %404 = vmatpush.msra.mxu0 %v372_v46  ;;  %v675_v20 = vld [vmem:[%s1069_s3 + $0x80] sm:$0xff] }
  0x24   : > { %525 = vmatpush.msra.mxu3 %v711_v43  ;;  %441 = vmatpush.msra.mxu1 %v680_v47  ;;  %301 = vst [vmem:[%s274_s15] sm:$0xff] %v299_v1  ;;  %v305_v7 = vrot.slane %v299_v1, 4  ;;  %v306_v8 = vrot.slane %v300_v2, 4  ;;  %v339_v9 = vsel %vm338_vm0, %v299_v1, -inf  ;;  %v353_v10 = vsel %vm338_vm0, %v300_v2, -inf }
  0x25   : > { %489 = vmatpush.msra.mxu2 %v694_v51  ;;  %405 = vmatpush.msra.mxu0 %v371_v53  ;;  %302 = vst [vmem:[%s274_s15 + $0x8] sm:$0xff] %v300_v2  ;;  %v340_v13 = vrot.slane %v339_v9, 4  ;;  %v354_v14 = vrot.slane %v353_v10, 4  ;;  %v310_v15 = vsel %vm309_vm1, %v299_v1, -inf  ;;  %v324_v16 = vsel %vm309_vm1, %v300_v2, -inf }
  0x26   : > { %526 = vmatpush.msra.mxu3 %v710_v52  ;;  %442 = vmatpush.msra.mxu1 %v679_v54  ;;  %v346_v17 = vsel %vm338_vm0, %v305_v7, -inf  ;;  %v360_v18 = vsel %vm338_vm0, %v306_v8, -inf  ;;  %v311_v21 = vrot.slane %v310_v15, 4  ;;  %v317_v22 = vsel %vm309_vm1, %v305_v7, -inf }
  0x27   : > { %490 = vmatpush.msra.mxu2 %v693_v57  ;;  %406 = vmatpush.msra.mxu0 %v370_v59  ;;  %v341_v23 = vmax.f32 %v339_v9, %v340_v13  ;;  %v347_v24 = vrot.slane %v346_v17, 4  ;;  %v355_v25 = vmax.f32 %v353_v10, %v354_v14  ;;  %v361_v26 = vrot.slane %v360_v18, 4 }
  0x28   : > { %527 = vmatpush.msra.mxu3 %v709_v58  ;;  %443 = vmatpush.msra.mxu1 %v678_v60  ;;  %v312_v27 = vmax.f32 %v310_v15, %v311_v21  ;;  %v318_v28 = vrot.slane %v317_v22, 4  ;;  %v325_v29 = vrot.slane %v324_v16, 4  ;;  %v331_v30 = vsel %vm309_vm1, %v306_v8, -inf }
  0x29   : > { %491 = vmatpush.msra.mxu2 %v692_v63  ;;  %407 = vmatpush.msra.mxu0 %v369_v3  ;;  %v342_v31 = vrot.slane %v341_v23, 2  ;;  %v348_v32 = vmax.f32 %v346_v17, %v347_v24  ;;  %v356_v33 = vrot.slane %v355_v25, 2  ;;  %v362_v34 = vmax.f32 %v360_v18, %v361_v26 }
  0x2a   : > { %528 = vmatpush.msra.mxu3 %v708_v0  ;;  %444 = vmatpush.msra.mxu1 %v677_v4  ;;  %v313_v35 = vrot.slane %v312_v27, 2  ;;  %v319_v36 = vmax.f32 %v317_v22, %v318_v28  ;;  %v326_v37 = vmax.f32 %v324_v16, %v325_v29  ;;  %v332_v38 = vrot.slane %v331_v30, 4 }
  0x2b   : > { %492 = vmatpush.msra.mxu2 %v691_v5  ;;  %408 = vmatpush.msra.mxu0 %v368_v11  ;;  %v343_v39 = vmax.f32 %v341_v23, %v342_v31  ;;  %v349_v40 = vrot.slane %v348_v32, 2  ;;  %v357_v41 = vmax.f32 %v355_v25, %v356_v33  ;;  %v363_v42 = vrot.slane %v362_v34, 2 }
  0x2c   : > { %529 = vmatpush.msra.mxu3 %v707_v6  ;;  %445 = vmatpush.msra.mxu1 %v676_v12  ;;  %v314_v43 = vmax.f32 %v312_v27, %v313_v35  ;;  %v320_v44 = vrot.slane %v319_v36, 2  ;;  %v327_v45 = vrot.slane %v326_v37, 2  ;;  %v333_v46 = vmax.f32 %v331_v30, %v332_v38 }
  0x2d   : > { %409 = vmatpush.msra.mxu0 %v367_v19  ;;  %v344_v47 = vrot.slane %v343_v39, 1  ;;  %v350_v48 = vmax.f32 %v348_v32, %v349_v40  ;;  %v358_v49 = vrot.slane %v357_v41, 1  ;;  %v364_v50 = vmax.f32 %v362_v34, %v363_v42 }
  0x2e   : > { %446 = vmatpush.msra.mxu1 %v675_v20  ;;  %v315_v51 = vrot.slane %v314_v43, 1  ;;  %v321_v52 = vmax.f32 %v319_v36, %v320_v44  ;;  %v328_v53 = vmax.f32 %v326_v37, %v327_v45  ;;  %v334_v54 = vrot.slane %v333_v46, 2 }
  0x2f   : > { %v345_v55 = vmax.f32 %v343_v39, %v344_v47  ;;  %v351_v56 = vrot.slane %v350_v48, 1  ;;  %v359_v57 = vmax.f32 %v357_v41, %v358_v49  ;;  %v365_v58 = vrot.slane %v364_v50, 1 }
  0x30   : > { %v316_v59 = vmax.f32 %v314_v43, %v315_v51  ;;  %v322_v60 = vrot.slane %v321_v52, 1  ;;  %v329_v61 = vrot.slane %v328_v53, 1  ;;  %v335_v62 = vmax.f32 %v333_v46, %v334_v54 }
  0x31   : > { %v352_v63 = vmax.f32 %v350_v48, %v351_v56  ;;  %v366_v0 = vmax.f32 %v364_v50, %v365_v58 }
  0x32   : > { %v323_v1 = vmax.f32 %v321_v52, %v322_v60  ;;  %v330_v2 = vmax.f32 %v328_v53, %v329_v61  ;;  %v336_v3 = vrot.slane %v335_v62, 1 }
  0x33   : > { %v473_v4 = vsel %vm387_vm2, %v352_v63, %v345_v55 }
  0x34   : > { %v474_v5 = vsel %vm389_vm3, %v359_v57, %v473_v4  ;;  %v337_v6 = vmax.f32 %v335_v62, %v336_v3  ;;  %v388_v7 = vsel %vm387_vm2, %v323_v1, %v316_v59 }
  0x35   : > { %v475_v8 = vsel %vm391_vm4, %v366_v0, %v474_v5  ;;  %v390_v9 = vsel %vm389_vm3, %v330_v2, %v388_v7 }
  0x36   : > { %493 = vmatmul.f32.vlgmr.msra.gmra.mxu2 %v475_v8  ;;  %530 = vmatmul.f32.vlgmr.msra.gmra.mxu3 %v475_v8  ;;  %v392_v10 = vsel %vm391_vm4, %v337_v6, %v390_v9 }
  0x37   : > { %410 = vmatmul.f32.vlgmr.msra.gmra.mxu0 %v392_v10  ;;  %447 = vmatmul.f32.vlgmr.msra.gmra.mxu1 %v392_v10 }
  0xb4   : > { %v411_v11 = vpop.f32.mrf.mxu0  ;;  %v448_v12 = vpop.f32.mrf.mxu1 }
  0xb5   : > { %v451_v13 = vmax.f32 %v411_v11, %v448_v12 }
  0xb9   : > { %v494_v14 = vpop.f32.mrf.mxu2  ;;  %v531_v15 = vpop.f32.mrf.mxu3 }
  0xba   : > { %v534_v16 = vmax.f32 %v494_v14, %v531_v15 }
  0xbc   : > { %v535_v17 = vadd.f32 %v534_v16, %v451_v13 }
  0xbe   : > { %536 = vst [vmem:[%s282_s14] sm:$0xf] %v535_v17 }
  0xbf PF: > { %s16_s20 = sadd.s32 1, %s779_s20   ;;  %s1072_s18 = smov %s775_s19 }
  0xc0   : > { %p13_p5 = scmp.ge.s32.totalorder %s16_s20, 4   ;;  %s1073_s19 = smov %s1075_s21 }
  0xc2   :  { %15 = sbr.rel (!%p13_p5) target bundleno = 2 (0x2), region = 81 }

</bundles_post_ra>
